<compile_context>
chip_gen: v7x
topology: tpu7x:2x2x1
jax: 0.10.0
libtpu: 0.0.40
codegen_flags: <defaults>
</compile_context>

<pallas_src>
import functools

import jax
import jax.numpy as jnp
from jax.experimental import pallas as pl
from jax.experimental.pallas import tpu as pltpu

TM_DEFAULT = 1024   # rows per grid step


def _res1d_kernel(x_ref, w_ref, b_ref, o_ref):
    # x_ref: (TM, W) f32 tile; w_ref: (W, W) bf16 resident; b_ref: (1, W) f32.
    x = x_ref[...]

    # MXU matmul: bf16 operands, f32 accumulate.
    h = jnp.dot(x.astype(jnp.bfloat16), w_ref[...],
                preferred_element_type=jnp.float32)

    # Bias + activation (ReLU) in f32 on the VPU.
    # TODO(synk): `act` is a constructor-supplied module; fixed to ReLU here.
    h = jnp.maximum(h + b_ref[...], 0.0)

    # Residual connection in exact f32.
    o_ref[...] = (h + x).astype(o_ref.dtype)


@functools.partial(jax.jit, static_argnames=("tm",))
def res1d(x, weight, bias, *, tm=TM_DEFAULT):
    """Res1D forward.

    x:      (..., width) float32
    weight: (width, width) float32, torch nn.Linear layout (out_features, in_features)
    bias:   (width,) float32
    """
    width = x.shape[-1]
    x2 = x.reshape(-1, width)
    n = x2.shape[0]

    # One-time (tiny) parameter prep: torch (out,in) -> (in,out), bf16 for MXU.
    w_io = weight.T.astype(jnp.bfloat16)
    b_row = bias.reshape(1, width).astype(jnp.float32)

    # Don't over-allocate for tiny inputs; keep the row tile a multiple of 8.
    tm = min(tm, max(8, ((n + 7) // 8) * 8))
    grid = (pl.cdiv(n, tm),)   # ragged tail: Pallas masks the partial block

    out = pl.pallas_call(
        _res1d_kernel,
        out_shape=jax.ShapeDtypeStruct((n, width), x2.dtype),
        grid=grid,
        in_specs=[
            pl.BlockSpec((tm, width), lambda i: (i, 0)),
            # Weight & bias stay resident in VMEM for the whole grid
            # (no constant-index double-buffered blocks).
            pl.BlockSpec(memory_space=pltpu.MemorySpace.VMEM),
            pl.BlockSpec(memory_space=pltpu.MemorySpace.VMEM),
        ],
        out_specs=pl.BlockSpec((tm, width), lambda i: (i, 0)),
        compiler_params=pltpu.CompilerParams(
            dimension_semantics=("parallel",)),
    )(x2, w_io, b_row)

    return out.reshape(x.shape)


def _reference(x, weight, bias):
    h = jnp.maximum(x @ weight.T + bias, 0.0)
    return h + x


if __name__ == "__main__":
    key = jax.random.PRNGKey(0)
    k_x, k_w, k_b = jax.random.split(key, 3)

    WIDTH = 128
    B, S = 4, 500   # 2000 rows -> 2 grid steps with a ragged (masked) tail
    x = jax.random.normal(k_x, (B, S, WIDTH), jnp.float32)

    # torch.nn.Linear default init: U(-1/sqrt(width), 1/sqrt(width))
    bound = 1.0 / (WIDTH ** 0.5)
    weight = jax.random.uniform(k_w, (WIDTH, WIDTH), jnp.float32, -bound, bound)
    bias = jax.random.uniform(k_b, (WIDTH,), jnp.float32, -bound, bound)

    out = res1d(x, weight, bias)
    out = jax.block_until_ready(out)

    ref = _reference(x, weight, bias)
    assert out.shape == x.shape
    # bf16 MXU operands (f32 accumulate) vs f32 reference -> bf16-level tolerance.
    max_err = float(jnp.max(jnp.abs(out - ref)))
    assert jnp.allclose(out, ref, atol=2e-2, rtol=2e-2), max_err
    print("KERNEL_OK")
</pallas_src>

<mosaic_0001>
module attributes {stable_mosaic.version = 11 : i64} {
  func.func @_res1d_kernel(%arg0: i32, %arg1: memref<1024x128xf32, #tpu.memory_space<vmem>>, %arg2: memref<128x128xbf16, #tpu.memory_space<vmem>>, %arg3: memref<1x128xf32, #tpu.memory_space<vmem>>, %arg4: memref<1024x128xf32, #tpu.memory_space<vmem>>) attributes {dimension_semantics = [#tpu.dimension_semantics<parallel>], iteration_bounds = array<i64: 2>, scalar_prefetch = 0 : i64, scratch_operands = 0 : i64, tpu.core_type = #tpu.core_type<tc>, window_params = [{transform_indices = @transform_0, window_bounds = array<i64: 1024, 128>}, {pipeline_mode = #tpu.pipeline_mode<synchronous>, transform_indices = @transform_1, window_bounds = array<i64: 128, 128>}, {pipeline_mode = #tpu.pipeline_mode<synchronous>, transform_indices = @transform_2, window_bounds = array<i64: 1, 128>}, {transform_indices = @transform_3, window_bounds = array<i64: 1024, 128>}]} {
    %c0 = arith.constant 0 : index
    %c0_0 = arith.constant 0 : index
    %0 = vector.load %arg1[%c0, %c0_0] : memref<1024x128xf32, #tpu.memory_space<vmem>>, vector<1024x128xf32>
    %1 = arith.truncf %0 : vector<1024x128xf32> to vector<1024x128xbf16>
    %c0_1 = arith.constant 0 : index
    %c0_2 = arith.constant 0 : index
    %2 = vector.load %arg2[%c0_1, %c0_2] : memref<128x128xbf16, #tpu.memory_space<vmem>>, vector<128x128xbf16>
    %cst = arith.constant dense<0.000000e+00> : vector<1024x128xf32>
    %3 = tpu.matmul %1, %2, %cst {dimension_numbers = #tpu.dot_dimension_numbers<[1], [0], [0], [1], [0, 0, 1, 1], [], []>} : vector<1024x128xbf16>, vector<128x128xbf16>, vector<1024x128xf32> -> vector<1024x128xf32>
    %c0_3 = arith.constant 0 : index
    %c0_4 = arith.constant 0 : index
    %4 = vector.load %arg3[%c0_3, %c0_4] : memref<1x128xf32, #tpu.memory_space<vmem>>, vector<1x128xf32>
    %5 = vector.broadcast %4 : vector<1x128xf32> to vector<1024x128xf32>
    %6 = arith.addf %3, %5 : vector<1024x128xf32>
    %cst_5 = arith.constant 0.000000e+00 : f32
    %7 = vector.broadcast %cst_5 : f32 to vector<1024x128xf32>
    %8 = arith.maximumf %6, %7 : vector<1024x128xf32>
    %9 = arith.addf %8, %0 : vector<1024x128xf32>
    %c0_6 = arith.constant 0 : index
    %c0_7 = arith.constant 0 : index
    %10 = vector.load %arg4[%c0_6, %c0_7] : memref<1024x128xf32, #tpu.memory_space<vmem>>, vector<1024x128xf32>
    tpu.vector_store %arg4[%c0_6, %c0_7], %9 {strides = array<i32>} : memref<1024x128xf32, #tpu.memory_space<vmem>>, vector<1024x128xf32>,
    return
  }
  func.func @transform_0(%arg0: i32) -> (i32, i32) {
    %c0_i32 = arith.constant 0 : i32
    %c0_i32_0 = arith.constant 0 : i32
    return %arg0, %c0_i32 : i32, i32
  }
  func.func @transform_1(%arg0: i32) -> (i32, i32) {
    %c0_i32 = arith.constant 0 : i32
    %c0_i32_0 = arith.constant 0 : i32
    %c0_i32_1 = arith.constant 0 : i32
    return %c0_i32, %c0_i32_0 : i32, i32
  }
  func.func @transform_2(%arg0: i32) -> (i32, i32) {
    %c0_i32 = arith.constant 0 : i32
    %c0_i32_0 = arith.constant 0 : i32
    %c0_i32_1 = arith.constant 0 : i32
    return %c0_i32, %c0_i32_0 : i32, i32
  }
  func.func @transform_3(%arg0: i32) -> (i32, i32) {
    %c0_i32 = arith.constant 0 : i32
    %c0_i32_0 = arith.constant 0 : i32
    return %arg0, %c0_i32 : i32, i32
  }
}

</mosaic_0001>

<bundles_post_ra>
// kernel: res1d.1
= control target key start
LH: loop header
LB: loop body
LE: loop exit
PB: predicated region body
PF: predicated region fallthrough
CT: control target
= control target key end

     0   :  { %s2374_s12 = smov 0   ;;  %s2376_s13 = smov 0   ;;  %s3405_s0 = inlined_call_operand.vmem [shape: f32[2000,128], index: 0, kind: input, shape index: {}]   ;;  %s3406_s1 = inlined_call_operand.vmem [shape: bf16[128,128], index: 1, kind: input, shape index: {}]   ;;  %s3407_s2 = inlined_call_operand.vmem [shape: f32[1,128], index: 2, kind: input, shape index: {}]   ;;  %s3408_s3 = inlined_call_operand.vmem [shape: f32[2000,128], index: 3, kind: output, shape index: {}]  }
   0x1   :  { %s2378_s14 = smov 0  }
   0x2 LB: > { %s2387_s15 = sadd.s32 4294967295, %s2320_s14   ;;  %s2389_s16 = sadd.s32 1, %s2320_s14   ;;  %s2320_s14 = sphi %s2378_s14, %s3525_s14   ;;  %s2316_s13 = sphi %s2376_s13, %s3524_s13   ;;  %s2312_s12 = sphi %s2374_s12, %s3523_s12  }
   0x3   : > { %s85_s17 = ssub.s32 %s2320_s14, %s2389_s16  ;;  %s88_s18 = sadd.s32 1, %s2316_s13 }
   0x4   : > { %p86_p0 = scmp.eq.s32.totalorder %s85_s17, 0  ;;  %p98_p1 = scmp.ne.s32.totalorder %s2316_s13, %s2312_s12 }
   0x5   : > { %p99_p2 = scmp.eq.s32.totalorder %s2387_s15, 1  ;;  %p1855_p3 = scmp.ge.s32.totalorder %s2320_s14, 1 }
   0x6   : > { %s2397_s19 = scalar_select %p86_p0, %s2316_s13, %s88_s18  }
   0x7   : > { %p2399_p4 = por %p99_p2, %p98_p1  ;;  %p146_p5 = scmp.lt.s32.totalorder %s2320_s14, 3 }
   0x9   : > { %p147_p6 = pnand %p1855_p3, %p146_p5 }
   0xb   : > { %150 = sbr.rel (%p147_p6) target bundleno = 465 (0x1d1), region = 32 }
  0x12   : > { %v2208_v0 = vld [vmem:[%s3406_s1] sm:$0xff]   ;;  %s2407_s23 = sshll.u32 %s2387_s15, 7  ;;  %v2209_v1 = vld [vmem:[%s3406_s1 + $0x8] sm:$0xff]   ;;  %v2210_v2 = vld [vmem:[%s3406_s1 + $0x10] sm:$0xff]   ;;  %s170_s22 = sand.u32 1, %s2312_s12  }
  0x13   : > { %p178_p7 = scmp.lt.s32.totalorder %s2407_s23, 249  ;;  %1960 = vmatprep.subr.bf16.mxu0 %v2208_v0  ;;  %2104 = vmatprep.subr.bf16.mxu1 %v2208_v0  ;;  %v2211_v3 = vld [vmem:[%s3406_s1 + $0x18] sm:$0xff]   ;;  %v2212_v10 = vld [vmem:[%s3406_s1 + $0x20] sm:$0xff]   ;;  %v2213_v11 = vld [vmem:[%s3406_s1 + $0x28] sm:$0xff]   ;;  %s1885_s30 = sshll.u32 (%p2399_p4), %s2387_s15, 10 }
  0x14   : > { %1961 = vmatpush3.bf16.msra.mxu0 %v2208_v0  ;;  %2112 = vmatpush3.bf16.msra.mxu1 %v2208_v0  ;;  %v2214_v12 = vld [vmem:[%s3406_s1 + $0x30] sm:$0xff]   ;;  %v2215_v13 = vld [vmem:[%s3406_s1 + $0x38] sm:$0xff]   ;;  %s3206_s7 = scalar_lea.vmem (%p2399_p4), %s3408_s3, %s1885_s30  }
  0x15   : > { %s179_s26 = scalar_select %p178_p7, %s2407_s23, 249  ;;  %1962 = vmatprep.subr.bf16.mxu0 %v2209_v1  ;;  %2105 = vmatprep.subr.bf16.mxu1 %v2209_v1 }
  0x17   : > { %s1858_s29 = sshll.u32 %s179_s26, 3  ;;  %s1856_s26 = sshll.u32 %s170_s22, 10 }
  0x18   : > { %s2420_s5 = scalar_lea.vmem %s3405_s0, %s1858_s29  ;;  %1963 = vmatpush3.bf16.msra.mxu0 %v2209_v1  ;;  %2113 = vmatpush3.bf16.msra.mxu1 %v2209_v1  ;;  %s2820_s12 = scalar_lea.vmem [#allocation2], %s1856_s26  }
  0x19   : > { %1964 = vmatprep.subr.bf16.mxu0 %v2210_v2  ;;  %2106 = vmatprep.subr.bf16.mxu1 %v2210_v2  ;;  %v2426_v4 = vld [vmem:[%s2420_s5] sm:$0xff]  ;;  %v2429_v5 = vld [vmem:[%s2420_s5 + $0x8] sm:$0xff]  ;;  %v2454_v14 = vld [vmem:[%s2420_s5 + $0x10] sm:$0xff]  ;;  %s1393_s29 = ssub.s32 (%p2399_p4), 250, %s2407_s23 }
  0x1a   : > { %v2432_v6 = vld [vmem:[%s2420_s5 + $0x200] sm:$0xff]  ;;  %v321_v7 = vpack.c.bf16 %v2429_v5, %v2426_v4  ;;  %v2437_v8 = vld [vmem:[%s2420_s5 + $0x208] sm:$0xff]  ;;  %v2457_v15 = vld [vmem:[%s2420_s5 + $0x18] sm:$0xff]  ;;  %p1394_p8 = scmp.lt.s32.totalorder (%p2399_p4), %s1393_s29, 128 }
  0x1b   : > { %v353_v9 = vpack.c.bf16 %v2437_v8, %v2432_v6  ;;  %v2460_v16 = vld [vmem:[%s2420_s5 + $0x210] sm:$0xff]  ;;  %v2463_v17 = vld [vmem:[%s2420_s5 + $0x218] sm:$0xff]  ;;  %v2466_v18 = vld [vmem:[%s2420_s5 + $0x20] sm:$0xff]  ;;  %v322_v22 = vpack.c.bf16 %v2457_v15, %v2454_v14 }
  0x1c   : > { %1965 = vmatpush3.bf16.msra.mxu0 %v2210_v2  ;;  %2114 = vmatpush3.bf16.msra.mxu1 %v2210_v2  ;;  %v2469_v19 = vld [vmem:[%s2420_s5 + $0x28] sm:$0xff]  ;;  %v2472_v20 = vld [vmem:[%s2420_s5 + $0x220] sm:$0xff]  ;;  %v354_v23 = vpack.c.bf16 %v2463_v17, %v2460_v16  ;;  %v2486_v26 = vld [vmem:[%s2420_s5 + $0x30] sm:$0xff] }
  0x1d   : > { %1966 = vmatprep.subr.bf16.mxu0 %v2211_v3  ;;  %2107 = vmatprep.subr.bf16.mxu1 %v2211_v3  ;;  %v2475_v21 = vld [vmem:[%s2420_s5 + $0x228] sm:$0xff]  ;;  %v323_v24 = vpack.c.bf16 %v2469_v19, %v2466_v18  ;;  %v2489_v27 = vld [vmem:[%s2420_s5 + $0x38] sm:$0xff]  ;;  %v2492_v28 = vld [vmem:[%s2420_s5 + $0x230] sm:$0xff] }
  0x1e   : > { %1976 = vmatprep.mubr.bf16.mxu0 %v321_v7  ;;  %2040 = vmatprep.mubr.bf16.mxu1 %v353_v9  ;;  %v355_v25 = vpack.c.bf16 %v2475_v21, %v2472_v20  ;;  %v2495_v29 = vld [vmem:[%s2420_s5 + $0x238] sm:$0xff]  ;;  %v2498_v30 = vld [vmem:[%s2420_s5 + $0x40] sm:$0xff]  ;;  %v2501_v31 = vld [vmem:[%s2420_s5 + $0x48] sm:$0xff]  ;;  %v324_v34 = vpack.c.bf16 %v2489_v27, %v2486_v26 }
  0x1f   : > { %v2504_v32 = vld [vmem:[%s2420_s5 + $0x240] sm:$0xff]  ;;  %v2507_v33 = vld [vmem:[%s2420_s5 + $0x248] sm:$0xff]  ;;  %v356_v35 = vpack.c.bf16 %v2495_v29, %v2492_v28  ;;  %v325_v36 = vpack.c.bf16 %v2501_v31, %v2498_v30  ;;  %v2518_v38 = vld [vmem:[%s2420_s5 + $0x50] sm:$0xff] }
  0x20   : > { %1967 = vmatpush3.bf16.msra.mxu0 %v2211_v3  ;;  %2115 = vmatpush3.bf16.msra.mxu1 %v2211_v3  ;;  %v357_v37 = vpack.c.bf16 %v2507_v33, %v2504_v32  ;;  %v2521_v39 = vld [vmem:[%s2420_s5 + $0x58] sm:$0xff]  ;;  %v2524_v40 = vld [vmem:[%s2420_s5 + $0x250] sm:$0xff]  ;;  %v2530_v42 = vld [vmem:[%s2420_s5 + $0x60] sm:$0xff] }
  0x21   : > { %1968 = vmatprep.subr.bf16.mxu0 %v2212_v10  ;;  %2108 = vmatprep.subr.bf16.mxu1 %v2212_v10  ;;  %v2527_v41 = vld [vmem:[%s2420_s5 + $0x258] sm:$0xff]  ;;  %v2533_v43 = vld [vmem:[%s2420_s5 + $0x68] sm:$0xff]  ;;  %v2536_v44 = vld [vmem:[%s2420_s5 + $0x260] sm:$0xff]  ;;  %v326_v46 = vpack.c.bf16 %v2521_v39, %v2518_v38 }
  0x22   : > { %v2539_v45 = vld [vmem:[%s2420_s5 + $0x268] sm:$0xff]  ;;  %v358_v47 = vpack.c.bf16 %v2527_v41, %v2524_v40  ;;  %v327_v48 = vpack.c.bf16 %v2533_v43, %v2530_v42  ;;  %v2550_v50 = vld [vmem:[%s2420_s5 + $0x70] sm:$0xff]  ;;  %v2553_v51 = vld [vmem:[%s2420_s5 + $0x78] sm:$0xff] }
  0x23   : > { %v359_v49 = vpack.c.bf16 %v2539_v45, %v2536_v44  ;;  %v2556_v52 = vld [vmem:[%s2420_s5 + $0x270] sm:$0xff]  ;;  %v2559_v53 = vld [vmem:[%s2420_s5 + $0x278] sm:$0xff]  ;;  %v2562_v54 = vld [vmem:[%s2420_s5 + $0x80] sm:$0xff]  ;;  %v328_v58 = vpack.c.bf16 %v2553_v51, %v2550_v50 }
  0x24   : > { %1969 = vmatpush3.bf16.msra.mxu0 %v2212_v10  ;;  %2116 = vmatpush3.bf16.msra.mxu1 %v2212_v10  ;;  %v2565_v55 = vld [vmem:[%s2420_s5 + $0x88] sm:$0xff]  ;;  %v2568_v56 = vld [vmem:[%s2420_s5 + $0x280] sm:$0xff]  ;;  %v360_v59 = vpack.c.bf16 %v2559_v53, %v2556_v52  ;;  %v2582_v62 = vld [vmem:[%s2420_s5 + $0x90] sm:$0xff] }
  0x25   : > { %1970 = vmatprep.subr.bf16.mxu0 %v2213_v11  ;;  %2109 = vmatprep.subr.bf16.mxu1 %v2213_v11  ;;  %v2571_v57 = vld [vmem:[%s2420_s5 + $0x288] sm:$0xff]  ;;  %v329_v60 = vpack.c.bf16 %v2565_v55, %v2562_v54  ;;  %v2585_v63 = vld [vmem:[%s2420_s5 + $0x98] sm:$0xff]  ;;  %v2588_v0 = vld [vmem:[%s2420_s5 + $0x290] sm:$0xff] }
  0x26   : > { %v361_v61 = vpack.c.bf16 %v2571_v57, %v2568_v56  ;;  %v2591_v1 = vld [vmem:[%s2420_s5 + $0x298] sm:$0xff]  ;;  %v2594_v2 = vld [vmem:[%s2420_s5 + $0xa0] sm:$0xff]  ;;  %v2597_v3 = vld [vmem:[%s2420_s5 + $0xa8] sm:$0xff]  ;;  %v330_v10 = vpack.c.bf16 %v2585_v63, %v2582_v62 }
  0x27   : > { %3446 = vst [vmem:[#allocation3_spill] sm:$0xff] %v2597_v3  ;;  %v2600_v7 = vld [vmem:[%s2420_s5 + $0x2a0] sm:$0xff]  ;;  %v2603_v9 = vld [vmem:[%s2420_s5 + $0x2a8] sm:$0xff] }
  0x28   : > { %1971 = vmatpush3.bf16.msra.mxu0 %v2213_v11  ;;  %2117 = vmatpush3.bf16.msra.mxu1 %v2213_v11  ;;  %3447 = vst [vmem:[#allocation4_spill] sm:$0xff] %v2600_v7  ;;  %3448 = vst [vmem:[#allocation5_spill] sm:$0xff] %v2603_v9  ;;  %v362_v11 = vpack.c.bf16 %v2591_v1, %v2588_v0 }
  0x29   : > { %1972 = vmatprep.subr.bf16.mxu0 %v2214_v12  ;;  %2110 = vmatprep.subr.bf16.mxu1 %v2214_v12 }
  0x2c   : > { %1973 = vmatpush3.bf16.msra.mxu0 %v2214_v12  ;;  %2118 = vmatpush3.bf16.msra.mxu1 %v2214_v12  ;;  %v331_v12 = vpack.c.bf16 %v2597_v3, %v2594_v2  ;;  %v242_v3 = vld [vmem:[%s2420_s5 + $0x188] sm:$0xff] }
  0x2d   : > { %1974 = vmatprep.subr.bf16.mxu0 %v2215_v13  ;;  %2111 = vmatprep.subr.bf16.mxu1 %v2215_v13 }
  0x30   : > { %1975 = vmatpush3.bf16.msra.mxu0 %v2215_v13  ;;  %2119 = vmatpush3.bf16.msra.mxu1 %v2215_v13  ;;  %v363_v13 = vpack.c.bf16 %v2603_v9, %v2600_v7  ;;  %v237_v9 = vld [vmem:[%s2420_s5 + $0x160] sm:$0xff] }
  0x33   : > { %1977 = vmatmul.mubr.bf16.vlgmr.msra.gmra.mrb[0].mxu0 %v322_v22  ;;  %2041 = vmatmul.mubr.bf16.vlgmr.msra.gmra.mrb[0].mxu1 %v354_v23  ;;  %v2614_v22 = vld [vmem:[%s2420_s5 + $0xb0] sm:$0xff]  ;;  %v2617_v23 = vld [vmem:[%s2420_s5 + $0xb8] sm:$0xff] }
  0x34   : > { %1980 = vmatprep.mubr.bf16.mxu0 %v323_v24  ;;  %2044 = vmatprep.mubr.bf16.mxu1 %v355_v25  ;;  %3449 = vst [vmem:[#allocation6_spill] sm:$0xff] %v2617_v23  ;;  %v2620_v24 = vld [vmem:[%s2420_s5 + $0x2b0] sm:$0xff]  ;;  %v2623_v25 = vld [vmem:[%s2420_s5 + $0x2b8] sm:$0xff] }
  0x35   : > { %3450 = vst [vmem:[#allocation7_spill] sm:$0xff] %v2623_v25 }
  0x3b   : > { %1981 = vmatmul.mubr.bf16.gmra.mrb[4].mxu0 %v324_v34  ;;  %2045 = vmatmul.mubr.bf16.gmra.mrb[4].mxu1 %v356_v35  ;;  %v2626_v34 = vld [vmem:[%s2420_s5 + $0xc0] sm:$0xff]  ;;  %v2629_v35 = vld [vmem:[%s2420_s5 + $0xc8] sm:$0xff] }
  0x3c   : > { %1984 = vmatprep.mubr.bf16.mxu0 %v325_v36  ;;  %2048 = vmatprep.mubr.bf16.mxu1 %v357_v37  ;;  %3451 = vst [vmem:[#allocation8_spill] sm:$0xff] %v2626_v34  ;;  %3452 = vst [vmem:[#allocation9_spill] sm:$0xff] %v2629_v35  ;;  %v2632_v36 = vld [vmem:[%s2420_s5 + $0x2c0] sm:$0xff]  ;;  %v2635_v37 = vld [vmem:[%s2420_s5 + $0x2c8] sm:$0xff] }
  0x3d   : > { %3453 = vst [vmem:[#allocation10_spill] sm:$0xff] %v2632_v36  ;;  %3454 = vst [vmem:[#allocation11_spill] sm:$0xff] %v2635_v37 }
  0x43   : > { %1985 = vmatmul.mubr.bf16.gmra.mrb[8].mxu0 %v326_v46  ;;  %2049 = vmatmul.mubr.bf16.gmra.mrb[8].mxu1 %v358_v47  ;;  %v332_v46 = vpack.c.bf16 %v2617_v23, %v2614_v22  ;;  %v364_v47 = vpack.c.bf16 %v2623_v25, %v2620_v24  ;;  %v317_v25 = vld [vmem:[%s2420_s5 + $0x3e0] sm:$0xff]  ;;  %v318_v23 = vld [vmem:[%s2420_s5 + $0x3e8] sm:$0xff] }
  0x44   : > { %1988 = vmatprep.mubr.bf16.mxu0 %v327_v48  ;;  %2052 = vmatprep.mubr.bf16.mxu1 %v359_v49  ;;  %v333_v48 = vpack.c.bf16 %v2629_v35, %v2626_v34  ;;  %v365_v49 = vpack.c.bf16 %v2635_v37, %v2632_v36  ;;  %v2678_v37 = vld [vmem:[%s2420_s5 + $0xf0] sm:$0xff]  ;;  %v2681_v35 = vld [vmem:[%s2420_s5 + $0xf8] sm:$0xff] }
  0x45   : > { %3463 = vst [vmem:[#allocation20_spill] sm:$0xff] %v2678_v37  ;;  %3464 = vst [vmem:[#allocation21_spill] sm:$0xff] %v2681_v35  ;;  %v2710_v36 = vld [vmem:[%s2420_s5 + $0x110] sm:$0xff]  ;;  %v2713_v34 = vld [vmem:[%s2420_s5 + $0x118] sm:$0xff] }
  0x46   : > { %3471 = vst [vmem:[#allocation28_spill] sm:$0xff] %v2710_v36  ;;  %3472 = vst [vmem:[#allocation29_spill] sm:$0xff] %v2713_v34 }
  0x4b   : > { %1989 = vmatmul.mubr.bf16.gmra.mrb[12].mxu0 %v328_v58  ;;  %2053 = vmatmul.mubr.bf16.gmra.mrb[12].mxu1 %v360_v59  ;;  %v2646_v58 = vld [vmem:[%s2420_s5 + $0xd0] sm:$0xff]  ;;  %v2649_v59 = vld [vmem:[%s2420_s5 + $0xd8] sm:$0xff] }
  0x4c   : > { %1992 = vmatprep.mubr.bf16.mxu0 %v329_v60  ;;  %2056 = vmatprep.mubr.bf16.mxu1 %v361_v61  ;;  %3455 = vst [vmem:[#allocation12_spill] sm:$0xff] %v2646_v58  ;;  %3456 = vst [vmem:[#allocation13_spill] sm:$0xff] %v2649_v59  ;;  %v2652_v60 = vld [vmem:[%s2420_s5 + $0x2d0] sm:$0xff]  ;;  %v2655_v61 = vld [vmem:[%s2420_s5 + $0x2d8] sm:$0xff] }
  0x4d   : > { %3457 = vst [vmem:[#allocation14_spill] sm:$0xff] %v2652_v60  ;;  %3458 = vst [vmem:[#allocation15_spill] sm:$0xff] %v2655_v61 }
  0x53   : > { %1993 = vmatmul.mubr.bf16.gmra.mrb[16].mxu0 %v330_v10  ;;  %2057 = vmatmul.mubr.bf16.gmra.mrb[16].mxu1 %v362_v11  ;;  %v2658_v10 = vld [vmem:[%s2420_s5 + $0xe0] sm:$0xff]  ;;  %v2661_v11 = vld [vmem:[%s2420_s5 + $0xe8] sm:$0xff] }
  0x54   : > { %1996 = vmatprep.mubr.bf16.mxu0 %v331_v12  ;;  %2060 = vmatprep.mubr.bf16.mxu1 %v363_v13  ;;  %3459 = vst [vmem:[#allocation16_spill] sm:$0xff] %v2658_v10  ;;  %3460 = vst [vmem:[#allocation17_spill] sm:$0xff] %v2661_v11  ;;  %v2664_v12 = vld [vmem:[%s2420_s5 + $0x2e0] sm:$0xff]  ;;  %v2667_v13 = vld [vmem:[%s2420_s5 + $0x2e8] sm:$0xff] }
  0x55   : > { %3461 = vst [vmem:[#allocation18_spill] sm:$0xff] %v2664_v12  ;;  %3462 = vst [vmem:[#allocation19_spill] sm:$0xff] %v2667_v13 }
  0x5b   : > { %1997 = vmatmul.mubr.bf16.gmra.mrb[20].mxu0 %v332_v46  ;;  %2061 = vmatmul.mubr.bf16.gmra.mrb[20].mxu1 %v364_v47  ;;  %v334_v46 = vpack.c.bf16 %v2649_v59, %v2646_v58  ;;  %v366_v47 = vpack.c.bf16 %v2655_v61, %v2652_v60  ;;  %v2684_v59 = vld [vmem:[%s2420_s5 + $0x2f0] sm:$0xff]  ;;  %v2687_v61 = vld [vmem:[%s2420_s5 + $0x2f8] sm:$0xff] }
  0x5c   : > { %2000 = vmatprep.mubr.bf16.mxu0 %v333_v48  ;;  %2064 = vmatprep.mubr.bf16.mxu1 %v365_v49  ;;  %v335_v48 = vpack.c.bf16 %v2661_v11, %v2658_v10  ;;  %v367_v49 = vpack.c.bf16 %v2667_v13, %v2664_v12  ;;  %3465 = vst [vmem:[#allocation22_spill] sm:$0xff] %v2684_v59  ;;  %3466 = vst [vmem:[#allocation23_spill] sm:$0xff] %v2687_v61  ;;  %v2690_v11 = vld [vmem:[%s2420_s5 + $0x100] sm:$0xff]  ;;  %v2693_v13 = vld [vmem:[%s2420_s5 + $0x108] sm:$0xff] }
  0x5d   : > { %3467 = vst [vmem:[#allocation24_spill] sm:$0xff] %v2690_v11  ;;  %3468 = vst [vmem:[#allocation25_spill] sm:$0xff] %v2693_v13  ;;  %v337_v12 = vpack.c.bf16 %v2693_v13, %v2690_v11  ;;  %v2722_v13 = vld [vmem:[%s2420_s5 + $0x120] sm:$0xff]  ;;  %v2742_v60 = vld [vmem:[%s2420_s5 + $0x330] sm:$0xff] }
  0x5e   : > { %3475 = vst [vmem:[#allocation32_spill] sm:$0xff] %v2722_v13  ;;  %3479 = vst [vmem:[#allocation36_spill] sm:$0xff] %v2742_v60  ;;  %v300_v58 = vld [vmem:[%s2420_s5 + $0x358] sm:$0xff] }
  0x63   : > { %2001 = vmatmul.mubr.bf16.gmra.mrb[24].mxu0 %v334_v46  ;;  %2065 = vmatmul.mubr.bf16.gmra.mrb[24].mxu1 %v366_v47  ;;  %v2696_v46 = vld [vmem:[%s2420_s5 + $0x300] sm:$0xff]  ;;  %v2699_v47 = vld [vmem:[%s2420_s5 + $0x308] sm:$0xff] }
  0x64   : > { %2004 = vmatprep.mubr.bf16.mxu0 %v335_v48  ;;  %2068 = vmatprep.mubr.bf16.mxu1 %v367_v49  ;;  %3469 = vst [vmem:[#allocation26_spill] sm:$0xff] %v2696_v46  ;;  %3470 = vst [vmem:[#allocation27_spill] sm:$0xff] %v2699_v47  ;;  %v336_v48 = vpack.c.bf16 %v2681_v35, %v2678_v37  ;;  %v368_v49 = vpack.c.bf16 %v2687_v61, %v2684_v59  ;;  %v2716_v35 = vld [vmem:[%s2420_s5 + $0x310] sm:$0xff]  ;;  %v2719_v61 = vld [vmem:[%s2420_s5 + $0x318] sm:$0xff] }
  0x65   : > { %v369_v10 = vpack.c.bf16 %v2699_v47, %v2696_v46  ;;  %3473 = vst [vmem:[#allocation30_spill] sm:$0xff] %v2716_v35  ;;  %3474 = vst [vmem:[#allocation31_spill] sm:$0xff] %v2719_v61  ;;  %v230_v47 = vld [vmem:[%s2420_s5 + $0x128] sm:$0xff]  ;;  %v2736_v59 = vld [vmem:[%s2420_s5 + $0x130] sm:$0xff] }
  0x66   : > { %v339_v46 = vpack.c.bf16 %v230_v47, %v2722_v13  ;;  %3477 = vst [vmem:[#allocation34_spill] sm:$0xff] %v2736_v59  ;;  %v2739_v37 = vld [vmem:[%s2420_s5 + $0x138] sm:$0xff]  ;;  %v234_v47 = vld [vmem:[%s2420_s5 + $0x148] sm:$0xff]  ;;  %v235_v13 = vld [vmem:[%s2420_s5 + $0x150] sm:$0xff] }
  0x67   : > { %3478 = vst [vmem:[#allocation35_spill] sm:$0xff] %v2739_v37 }
  0x6b   : > { %2005 = vmatmul.mubr.bf16.gmra.mrb[28].mxu0 %v336_v48  ;;  %2069 = vmatmul.mubr.bf16.gmra.mrb[28].mxu1 %v368_v49  ;;  %v2726_v48 = vld [vmem:[%s2420_s5 + $0x320] sm:$0xff]  ;;  %v294_v49 = vld [vmem:[%s2420_s5 + $0x328] sm:$0xff] }
  0x6c   : > { %2008 = vmatprep.mubr.bf16.mxu0 %v337_v12  ;;  %2072 = vmatprep.mubr.bf16.mxu1 %v369_v10  ;;  %3476 = vst [vmem:[#allocation33_spill] sm:$0xff] %v2726_v48  ;;  %v338_v12 = vpack.c.bf16 %v2713_v34, %v2710_v36  ;;  %v370_v10 = vpack.c.bf16 %v2719_v61, %v2716_v35  ;;  %v2745_v34 = vld [vmem:[%s2420_s5 + $0x338] sm:$0xff]  ;;  %v233_v61 = vld [vmem:[%s2420_s5 + $0x140] sm:$0xff]  ;;  %v2758_v36 = vld [vmem:[%s2420_s5 + $0x350] sm:$0xff] }
  0x6d   : > { %v371_v11 = vpack.c.bf16 %v294_v49, %v2726_v48  ;;  %3480 = vst [vmem:[#allocation37_spill] sm:$0xff] %v2745_v34  ;;  %v297_v49 = vld [vmem:[%s2420_s5 + $0x340] sm:$0xff]  ;;  %v236_v35 = vld [vmem:[%s2420_s5 + $0x158] sm:$0xff]  ;;  %3481 = vst [vmem:[#allocation38_spill] sm:$0xff] %v2758_v36 }
  0x73   : > { %2009 = vmatmul.mubr.bf16.gmra.mrb[32].mxu0 %v338_v12  ;;  %2073 = vmatmul.mubr.bf16.gmra.mrb[32].mxu1 %v370_v10  ;;  %v298_v12 = vld [vmem:[%s2420_s5 + $0x348] sm:$0xff]  ;;  %v340_v10 = vpack.c.bf16 %v2739_v37, %v2736_v59  ;;  %v241_v59 = vld [vmem:[%s2420_s5 + $0x180] sm:$0xff] }
  0x74   : > { %2012 = vmatprep.mubr.bf16.mxu0 %v339_v46  ;;  %2076 = vmatprep.mubr.bf16.mxu1 %v371_v11  ;;  %v372_v11 = vpack.c.bf16 %v2745_v34, %v2742_v60  ;;  %v341_v46 = vpack.c.bf16 %v234_v47, %v233_v61  ;;  %v373_v48 = vpack.c.bf16 %v298_v12, %v297_v49  ;;  %v238_v37 = vld [vmem:[%s2420_s5 + $0x168] sm:$0xff]  ;;  %v301_v34 = vld [vmem:[%s2420_s5 + $0x360] sm:$0xff]  ;;  %v304_v60 = vld [vmem:[%s2420_s5 + $0x378] sm:$0xff] }
  0x75   : > { %v302_v61 = vld [vmem:[%s2420_s5 + $0x368] sm:$0xff]  ;;  %v342_v47 = vpack.c.bf16 %v236_v35, %v235_v13  ;;  %v374_v49 = vpack.c.bf16 %v300_v58, %v2758_v36  ;;  %v343_v12 = vpack.c.bf16 %v238_v37, %v237_v9  ;;  %v305_v35 = vld [vmem:[%s2420_s5 + $0x380] sm:$0xff]  ;;  %v345_v58 = vpack.c.bf16 %v242_v3, %v241_v59 }
  0x76   : > { %v306_v9 = vld [vmem:[%s2420_s5 + $0x388] sm:$0xff] }
  0x77   : > { %v377_v13 = vpack.c.bf16 %v306_v9, %v305_v35  ;;  %v246_v36 = vld [vmem:[%s2420_s5 + $0x1a8] sm:$0xff]  ;;  %v247_v35 = vld [vmem:[%s2420_s5 + $0x1b0] sm:$0xff]  ;;  %v248_v9 = vld [vmem:[%s2420_s5 + $0x1b8] sm:$0xff] }
  0x78   : > { %v310_v3 = vld [vmem:[%s2420_s5 + $0x3a8] sm:$0xff] }
  0x7b   : > { %2013 = vmatmul.mubr.bf16.gmra.mrb[36].mxu0 %v340_v10  ;;  %2077 = vmatmul.mubr.bf16.gmra.mrb[36].mxu1 %v372_v11  ;;  %v375_v10 = vpack.c.bf16 %v302_v61, %v301_v34  ;;  %v240_v11 = vld [vmem:[%s2420_s5 + $0x178] sm:$0xff]  ;;  %v243_v61 = vld [vmem:[%s2420_s5 + $0x190] sm:$0xff] }
  0x7c   : > { %2016 = vmatprep.mubr.bf16.mxu0 %v341_v46  ;;  %2080 = vmatprep.mubr.bf16.mxu1 %v373_v48  ;;  %v239_v48 = vld [vmem:[%s2420_s5 + $0x170] sm:$0xff] }
  0x7d   : > { %v303_v46 = vld [vmem:[%s2420_s5 + $0x370] sm:$0xff]  ;;  %v344_v34 = vpack.c.bf16 %v240_v11, %v239_v48  ;;  %v309_v48 = vld [vmem:[%s2420_s5 + $0x3a0] sm:$0xff] }
  0x7e   : > { %v376_v37 = vpack.c.bf16 %v304_v60, %v303_v46  ;;  %v379_v46 = vpack.c.bf16 %v310_v3, %v309_v48  ;;  %v251_v48 = vld [vmem:[%s2420_s5 + $0x1d0] sm:$0xff]  ;;  %v252_v3 = vld [vmem:[%s2420_s5 + $0x1d8] sm:$0xff] }
  0x83   : > { %2017 = vmatmul.mubr.bf16.gmra.mrb[40].mxu0 %v342_v47  ;;  %2081 = vmatmul.mubr.bf16.gmra.mrb[40].mxu1 %v374_v49  ;;  %v244_v47 = vld [vmem:[%s2420_s5 + $0x198] sm:$0xff]  ;;  %v307_v49 = vld [vmem:[%s2420_s5 + $0x390] sm:$0xff] }
  0x84   : > { %2020 = vmatprep.mubr.bf16.mxu0 %v343_v12  ;;  %2084 = vmatprep.mubr.bf16.mxu1 %v375_v10  ;;  %v308_v12 = vld [vmem:[%s2420_s5 + $0x398] sm:$0xff]  ;;  %v245_v10 = vld [vmem:[%s2420_s5 + $0x1a0] sm:$0xff]  ;;  %v346_v59 = vpack.c.bf16 %v244_v47, %v243_v61  ;;  %v348_v47 = vpack.c.bf16 %v248_v9, %v247_v35  ;;  %v350_v35 = vpack.c.bf16 %v252_v3, %v251_v48 }
  0x85   : > { %v378_v60 = vpack.c.bf16 %v308_v12, %v307_v49  ;;  %v347_v11 = vpack.c.bf16 %v246_v36, %v245_v10  ;;  %v313_v61 = vld [vmem:[%s2420_s5 + $0x3c0] sm:$0xff]  ;;  %v314_v36 = vld [vmem:[%s2420_s5 + $0x3c8] sm:$0xff] }
  0x86   : > { %v381_v10 = vpack.c.bf16 %v314_v36, %v313_v61  ;;  %v319_v61 = vld [vmem:[%s2420_s5 + $0x3f0] sm:$0xff]  ;;  %v320_v36 = vld [vmem:[%s2420_s5 + $0x3f8] sm:$0xff] }
  0x8b   : > { %2021 = vmatmul.mubr.bf16.gmra.mrb[44].mxu0 %v344_v34  ;;  %2085 = vmatmul.mubr.bf16.gmra.mrb[44].mxu1 %v376_v37  ;;  %v311_v34 = vld [vmem:[%s2420_s5 + $0x3b0] sm:$0xff]  ;;  %v312_v37 = vld [vmem:[%s2420_s5 + $0x3b8] sm:$0xff] }
  0x8c   : > { %2024 = vmatprep.mubr.bf16.mxu0 %v345_v58  ;;  %2088 = vmatprep.mubr.bf16.mxu1 %v377_v13  ;;  %v249_v58 = vld [vmem:[%s2420_s5 + $0x1c0] sm:$0xff]  ;;  %v250_v13 = vld [vmem:[%s2420_s5 + $0x1c8] sm:$0xff]  ;;  %v380_v49 = vpack.c.bf16 %v312_v37, %v311_v34  ;;  %v383_v37 = vpack.c.bf16 %v318_v23, %v317_v25 }
  0x8d   : > { %v349_v12 = vpack.c.bf16 %v250_v13, %v249_v58  ;;  %v255_v58 = vld [vmem:[%s2420_s5 + $0x1f0] sm:$0xff]  ;;  %v256_v13 = vld [vmem:[%s2420_s5 + $0x1f8] sm:$0xff] }
  0x93   : > { %2025 = vmatmul.mubr.bf16.gmra.mrb[48].mxu0 %v346_v59  ;;  %2089 = vmatmul.mubr.bf16.gmra.mrb[48].mxu1 %v378_v60  ;;  %v315_v59 = vld [vmem:[%s2420_s5 + $0x3d0] sm:$0xff]  ;;  %v316_v60 = vld [vmem:[%s2420_s5 + $0x3d8] sm:$0xff] }
  0x94   : > { %2028 = vmatprep.mubr.bf16.mxu0 %v347_v11  ;;  %2092 = vmatprep.mubr.bf16.mxu1 %v379_v46  ;;  %v253_v11 = vld [vmem:[%s2420_s5 + $0x1e0] sm:$0xff]  ;;  %v254_v46 = vld [vmem:[%s2420_s5 + $0x1e8] sm:$0xff]  ;;  %v382_v9 = vpack.c.bf16 %v316_v60, %v315_v59 }
  0x95   : > { %v351_v34 = vpack.c.bf16 %v254_v46, %v253_v11 }
  0x9b   : > { %2029 = vmatmul.mubr.bf16.gmra.mrb[52].mxu0 %v348_v47  ;;  %2093 = vmatmul.mubr.bf16.gmra.mrb[52].mxu1 %v380_v49  ;;  %v352_v47 = vpack.c.bf16 %v256_v13, %v255_v58  ;;  %v384_v49 = vpack.c.bf16 %v320_v36, %v319_v61 }
  0x9c   : > { %2032 = vmatprep.mubr.bf16.mxu0 %v349_v12  ;;  %2096 = vmatprep.mubr.bf16.mxu1 %v381_v10  ;;  %v2806_v12 = vld [vmem:[%s3407_s2] ss:$0 sm:$0xff] }
  0xa3   : > { %2033 = vmatmul.mubr.bf16.gmra.mrb[56].mxu0 %v350_v35  ;;  %2097 = vmatmul.mubr.bf16.gmra.mrb[56].mxu1 %v382_v9 }
  0xa4   : > { %2036 = vmatprep.mubr.bf16.mxu0 %v351_v34  ;;  %2100 = vmatprep.mubr.bf16.mxu1 %v383_v37 }
  0xab   : > { %2037 = vmatmul.mubr.bf16.gmra.mrb[60].mxu0 %v352_v47  ;;  %2101 = vmatmul.mubr.bf16.gmra.mrb[60].mxu1 %v384_v49 }
 0x106   : > { %v1978_v10 = vpop.f32.mrb[0].mxu0  ;;  %v2042_v23 = vpop.f32.mrb[0].mxu1 }
 0x107   : > { %v499_v25 = vadd.f32 %v1978_v10, %v2806_v12  ;;  %v755_v48 = vadd.f32 %v2042_v23, %v2806_v12  ;;  %v490_v3 = vpop.f32.mrb[1].mxu0  ;;  %v746_v59 = vpop.f32.mrb[1].mxu1 }
 0x108   : > { %v491_v60 = vadd.f32 %v2806_v12, %v490_v3  ;;  %v747_v11 = vadd.f32 %v2806_v12, %v746_v59  ;;  %v1979_v46 = vpop.f32.mrb[2].mxu0  ;;  %v2043_v35 = vpop.f32.mrb[2].mxu1 }
 0x109   : > { %v1003_v9 = vmax.f32 %v499_v25, 0.0  ;;  %v1067_v34 = vmax.f32 %v755_v48, 0.0  ;;  %v502_v37 = vadd.f32 %v1979_v46, %v2806_v12  ;;  %v758_v58 = vadd.f32 %v2043_v35, %v2806_v12  ;;  %v493_v13 = vpop.f32.mrb[3].mxu0  ;;  %v749_v61 = vpop.f32.mrb[3].mxu1 }
 0x10a   : > { %v1001_v36 = vmax.f32 %v491_v60, 0.0  ;;  %v1065_v47 = vmax.f32 %v747_v11, 0.0  ;;  %v494_v49 = vadd.f32 %v2806_v12, %v493_v13  ;;  %v750_v10 = vadd.f32 %v2806_v12, %v749_v61 }
 0x10b   : > { %v1131_v23 = vadd.f32 %v1003_v9, %v2454_v14  ;;  %v1195_v3 = vadd.f32 %v1067_v34, %v2460_v16  ;;  %v1004_v59 = vmax.f32 %v502_v37, 0.0  ;;  %v1068_v7 = vmax.f32 %v758_v58, 0.0 }
 0x10c   : > { %v1129_v25 = vadd.f32 %v1001_v36, %v2426_v4  ;;  %v1193_v48 = vadd.f32 %v1065_v47, %v2432_v6  ;;  %v1002_v46 = vmax.f32 %v494_v49, 0.0  ;;  %v1066_v35 = vmax.f32 %v750_v10, 0.0 }
 0x10d   : > { %1259 = vst [vmem:[%s2820_s12 + $0x10] sm:$0xff] %v1131_v23  ;;  %1323 = vst [vmem:[%s2820_s12 + $0x210] sm:$0xff] %v1195_v3  ;;  %v1132_v14 = vadd.f32 %v1004_v59, %v2457_v15  ;;  %v1196_v4 = vadd.f32 %v1068_v7, %v2463_v17 }
 0x10e   : > { %1257 = vst [vmem:[%s2820_s12] sm:$0xff] %v1129_v25  ;;  %1321 = vst [vmem:[%s2820_s12 + $0x200] sm:$0xff] %v1193_v48  ;;  %v1130_v6 = vadd.f32 %v1002_v46, %v2429_v5  ;;  %v1194_v16 = vadd.f32 %v1066_v35, %v2437_v8  ;;  %v1982_v60 = vpop.f32.mrb[4].mxu0  ;;  %v2046_v11 = vpop.f32.mrb[4].mxu1 }
 0x10f   : > { %1260 = vst [vmem:[%s2820_s12 + $0x18] sm:$0xff] %v1132_v14  ;;  %1324 = vst [vmem:[%s2820_s12 + $0x218] sm:$0xff] %v1196_v4  ;;  %v515_v9 = vadd.f32 %v1982_v60, %v2806_v12  ;;  %v771_v34 = vadd.f32 %v2046_v11, %v2806_v12  ;;  %v506_v37 = vpop.f32.mrb[5].mxu0  ;;  %v762_v58 = vpop.f32.mrb[5].mxu1 }
 0x110   : > { %1258 = vst [vmem:[%s2820_s12 + $0x8] sm:$0xff] %v1130_v6  ;;  %1322 = vst [vmem:[%s2820_s12 + $0x208] sm:$0xff] %v1194_v16  ;;  %v507_v15 = vadd.f32 %v2806_v12, %v506_v37  ;;  %v763_v17 = vadd.f32 %v2806_v12, %v762_v58  ;;  %v1983_v7 = vpop.f32.mrb[6].mxu0  ;;  %v2047_v5 = vpop.f32.mrb[6].mxu1 }
 0x111   : > { %v1007_v13 = vmax.f32 %v515_v9, 0.0  ;;  %v1071_v8 = vmax.f32 %v771_v34, 0.0  ;;  %v518_v61 = vadd.f32 %v1983_v7, %v2806_v12  ;;  %v774_v36 = vadd.f32 %v2047_v5, %v2806_v12  ;;  %v509_v47 = vpop.f32.mrb[7].mxu0  ;;  %v765_v49 = vpop.f32.mrb[7].mxu1 }
 0x112   : > { %v1005_v10 = vmax.f32 %v507_v15, 0.0  ;;  %v1069_v23 = vmax.f32 %v763_v17, 0.0  ;;  %v510_v3 = vadd.f32 %v2806_v12, %v509_v47  ;;  %v766_v59 = vadd.f32 %v2806_v12, %v765_v49 }
 0x113   : > { %v1135_v25 = vadd.f32 %v1007_v13, %v2486_v26  ;;  %v1199_v48 = vadd.f32 %v1071_v8, %v2492_v28  ;;  %v1008_v46 = vmax.f32 %v518_v61, 0.0  ;;  %v1072_v35 = vmax.f32 %v774_v36, 0.0 }
 0x114   : > { %v1133_v14 = vadd.f32 %v1005_v10, %v2466_v18  ;;  %v1197_v4 = vadd.f32 %v1069_v23, %v2472_v20  ;;  %v1006_v6 = vmax.f32 %v510_v3, 0.0  ;;  %v1070_v16 = vmax.f32 %v766_v59, 0.0 }
 0x115   : > { %1263 = vst [vmem:[%s2820_s12 + $0x30] sm:$0xff] %v1135_v25  ;;  %1327 = vst [vmem:[%s2820_s12 + $0x230] sm:$0xff] %v1199_v48  ;;  %v1136_v60 = vadd.f32 %v1008_v46, %v2489_v27  ;;  %v1200_v26 = vadd.f32 %v1072_v35, %v2495_v29 }
 0x116   : > { %1261 = vst [vmem:[%s2820_s12 + $0x20] sm:$0xff] %v1133_v14  ;;  %1325 = vst [vmem:[%s2820_s12 + $0x220] sm:$0xff] %v1197_v4  ;;  %v1134_v28 = vadd.f32 %v1006_v6, %v2469_v19  ;;  %v1198_v11 = vadd.f32 %v1070_v16, %v2475_v21  ;;  %v1986_v9 = vpop.f32.mrb[8].mxu0  ;;  %v2050_v18 = vpop.f32.mrb[8].mxu1 }
 0x117   : > { %1264 = vst [vmem:[%s2820_s12 + $0x38] sm:$0xff] %v1136_v60  ;;  %1328 = vst [vmem:[%s2820_s12 + $0x238] sm:$0xff] %v1200_v26  ;;  %v531_v20 = vadd.f32 %v1986_v9, %v2806_v12  ;;  %v787_v34 = vadd.f32 %v2050_v18, %v2806_v12  ;;  %v522_v37 = vpop.f32.mrb[9].mxu0  ;;  %v778_v58 = vpop.f32.mrb[9].mxu1 }
 0x118   : > { %1262 = vst [vmem:[%s2820_s12 + $0x28] sm:$0xff] %v1134_v28  ;;  %1326 = vst [vmem:[%s2820_s12 + $0x228] sm:$0xff] %v1198_v11  ;;  %v523_v27 = vadd.f32 %v2806_v12, %v522_v37  ;;  %v779_v29 = vadd.f32 %v2806_v12, %v778_v58  ;;  %v1987_v15 = vpop.f32.mrb[10].mxu0  ;;  %v2051_v19 = vpop.f32.mrb[10].mxu1 }
 0x119   : > { %v1011_v17 = vmax.f32 %v531_v20, 0.0  ;;  %v1075_v21 = vmax.f32 %v787_v34, 0.0  ;;  %v534_v7 = vadd.f32 %v1987_v15, %v2806_v12  ;;  %v790_v5 = vadd.f32 %v2051_v19, %v2806_v12  ;;  %v525_v13 = vpop.f32.mrb[11].mxu0  ;;  %v781_v8 = vpop.f32.mrb[11].mxu1 }
 0x11a   : > { %v1009_v61 = vmax.f32 %v523_v27, 0.0  ;;  %v1073_v36 = vmax.f32 %v779_v29, 0.0  ;;  %v526_v47 = vadd.f32 %v2806_v12, %v525_v13  ;;  %v782_v49 = vadd.f32 %v2806_v12, %v781_v8 }
 0x11b   : > { %v1139_v10 = vadd.f32 %v1011_v17, %v2518_v38  ;;  %v1203_v23 = vadd.f32 %v1075_v21, %v2524_v40  ;;  %v1012_v3 = vmax.f32 %v534_v7, 0.0  ;;  %v1076_v59 = vmax.f32 %v790_v5, 0.0 }
 0x11c   : > { %v1137_v25 = vadd.f32 %v1009_v61, %v2498_v30  ;;  %v1201_v48 = vadd.f32 %v1073_v36, %v2504_v32  ;;  %v1010_v46 = vmax.f32 %v526_v47, 0.0  ;;  %v1074_v35 = vmax.f32 %v782_v49, 0.0 }
 0x11d   : > { %1267 = vst [vmem:[%s2820_s12 + $0x50] sm:$0xff] %v1139_v10  ;;  %1331 = vst [vmem:[%s2820_s12 + $0x250] sm:$0xff] %v1203_v23  ;;  %v1140_v14 = vadd.f32 %v1012_v3, %v2521_v39  ;;  %v1204_v38 = vadd.f32 %v1076_v59, %v2527_v41 }
 0x11e   : > { %1265 = vst [vmem:[%s2820_s12 + $0x40] sm:$0xff] %v1137_v25  ;;  %1329 = vst [vmem:[%s2820_s12 + $0x240] sm:$0xff] %v1201_v48  ;;  %v1138_v40 = vadd.f32 %v1010_v46, %v2501_v31  ;;  %v1202_v4 = vadd.f32 %v1074_v35, %v2507_v33  ;;  %v1990_v6 = vpop.f32.mrb[12].mxu0  ;;  %v2054_v30 = vpop.f32.mrb[12].mxu1 }
 0x11f   : > { %1268 = vst [vmem:[%s2820_s12 + $0x58] sm:$0xff] %v1140_v14  ;;  %1332 = vst [vmem:[%s2820_s12 + $0x258] sm:$0xff] %v1204_v38  ;;  %v547_v32 = vadd.f32 %v1990_v6, %v2806_v12  ;;  %v803_v16 = vadd.f32 %v2054_v30, %v2806_v12  ;;  %v538_v60 = vpop.f32.mrb[13].mxu0  ;;  %v794_v26 = vpop.f32.mrb[13].mxu1 }
 0x120   : > { %1266 = vst [vmem:[%s2820_s12 + $0x48] sm:$0xff] %v1138_v40  ;;  %1330 = vst [vmem:[%s2820_s12 + $0x248] sm:$0xff] %v1202_v4  ;;  %v539_v39 = vadd.f32 %v2806_v12, %v538_v60  ;;  %v795_v41 = vadd.f32 %v2806_v12, %v794_v26  ;;  %v1991_v28 = vpop.f32.mrb[14].mxu0  ;;  %v2055_v31 = vpop.f32.mrb[14].mxu1 }
 0x121   : > { %v1015_v11 = vmax.f32 %v547_v32, 0.0  ;;  %v1079_v33 = vmax.f32 %v803_v16, 0.0  ;;  %v550_v9 = vadd.f32 %v1991_v28, %v2806_v12  ;;  %v806_v18 = vadd.f32 %v2055_v31, %v2806_v12  ;;  %v541_v20 = vpop.f32.mrb[15].mxu0  ;;  %v797_v34 = vpop.f32.mrb[15].mxu1 }
 0x122   : > { %v1013_v37 = vmax.f32 %v539_v39, 0.0  ;;  %v1077_v58 = vmax.f32 %v795_v41, 0.0  ;;  %v542_v27 = vadd.f32 %v2806_v12, %v541_v20  ;;  %v798_v29 = vadd.f32 %v2806_v12, %v797_v34 }
 0x123   : > { %v1143_v15 = vadd.f32 %v1015_v11, %v2550_v50  ;;  %v1207_v19 = vadd.f32 %v1079_v33, %v2556_v52  ;;  %v1016_v17 = vmax.f32 %v550_v9, 0.0  ;;  %v1080_v21 = vmax.f32 %v806_v18, 0.0 }
 0x124   : > { %v1141_v7 = vadd.f32 %v1013_v37, %v2530_v42  ;;  %v1205_v5 = vadd.f32 %v1077_v58, %v2536_v44  ;;  %v1014_v13 = vmax.f32 %v542_v27, 0.0  ;;  %v1078_v8 = vmax.f32 %v798_v29, 0.0 }
 0x125   : > { %1271 = vst [vmem:[%s2820_s12 + $0x70] sm:$0xff] %v1143_v15  ;;  %1335 = vst [vmem:[%s2820_s12 + $0x270] sm:$0xff] %v1207_v19  ;;  %v1144_v61 = vadd.f32 %v1016_v17, %v2553_v51  ;;  %v1208_v50 = vadd.f32 %v1080_v21, %v2559_v53 }
 0x126   : > { %1269 = vst [vmem:[%s2820_s12 + $0x60] sm:$0xff] %v1141_v7  ;;  %1333 = vst [vmem:[%s2820_s12 + $0x260] sm:$0xff] %v1205_v5  ;;  %v1142_v52 = vadd.f32 %v1014_v13, %v2533_v43  ;;  %v1206_v36 = vadd.f32 %v1078_v8, %v2539_v45  ;;  %v1994_v47 = vpop.f32.mrb[16].mxu0  ;;  %v2058_v42 = vpop.f32.mrb[16].mxu1 }
 0x127   : > { %1272 = vst [vmem:[%s2820_s12 + $0x78] sm:$0xff] %v1144_v61  ;;  %1336 = vst [vmem:[%s2820_s12 + $0x278] sm:$0xff] %v1208_v50  ;;  %v563_v44 = vadd.f32 %v1994_v47, %v2806_v12  ;;  %v819_v49 = vadd.f32 %v2058_v42, %v2806_v12  ;;  %v554_v10 = vpop.f32.mrb[17].mxu0  ;;  %v810_v23 = vpop.f32.mrb[17].mxu1  ;;  %v3482_v50 = vld [vmem:[#allocation4_spill] sm:$0xff]  ;;  %v3483_v42 = vld [vmem:[#allocation6_spill] sm:$0xff] }
 0x128   : > { %1270 = vst [vmem:[%s2820_s12 + $0x68] sm:$0xff] %v1142_v52  ;;  %1334 = vst [vmem:[%s2820_s12 + $0x268] sm:$0xff] %v1206_v36  ;;  %v555_v51 = vadd.f32 %v2806_v12, %v554_v10  ;;  %v811_v53 = vadd.f32 %v2806_v12, %v810_v23  ;;  %v1995_v3 = vpop.f32.mrb[18].mxu0  ;;  %v2059_v43 = vpop.f32.mrb[18].mxu1  ;;  %v3486_v23 = vld [vmem:[#allocation5_spill] sm:$0xff] }
 0x129   : > { %v1019_v59 = vmax.f32 %v563_v44, 0.0  ;;  %v1083_v45 = vmax.f32 %v819_v49, 0.0  ;;  %v566_v25 = vadd.f32 %v1995_v3, %v2806_v12  ;;  %v822_v48 = vadd.f32 %v2059_v43, %v2806_v12  ;;  %v557_v46 = vpop.f32.mrb[19].mxu0  ;;  %v813_v35 = vpop.f32.mrb[19].mxu1  ;;  %v3484_v49 = vld [vmem:[#allocation7_spill] sm:$0xff] }
 0x12a   : > { %v1017_v14 = vmax.f32 %v555_v51, 0.0  ;;  %v1081_v38 = vmax.f32 %v811_v53, 0.0  ;;  %v558_v40 = vadd.f32 %v2806_v12, %v557_v46  ;;  %v814_v4 = vadd.f32 %v2806_v12, %v813_v35 }
 0x12b   : > { %v1147_v6 = vadd.f32 %v1019_v59, %v2582_v62  ;;  %v1211_v30 = vadd.f32 %v1083_v45, %v2588_v0  ;;  %v1020_v32 = vmax.f32 %v566_v25, 0.0  ;;  %v1084_v16 = vmax.f32 %v822_v48, 0.0 }
 0x12c   : > { %v1145_v60 = vadd.f32 %v1017_v14, %v2562_v54  ;;  %v1209_v26 = vadd.f32 %v1081_v38, %v2568_v56  ;;  %v1018_v39 = vmax.f32 %v558_v40, 0.0  ;;  %v1082_v41 = vmax.f32 %v814_v4, 0.0 }
 0x12d   : > { %1275 = vst [vmem:[%s2820_s12 + $0x90] sm:$0xff] %v1147_v6  ;;  %1339 = vst [vmem:[%s2820_s12 + $0x290] sm:$0xff] %v1211_v30  ;;  %v1148_v28 = vadd.f32 %v1020_v32, %v2585_v63  ;;  %v1212_v62 = vadd.f32 %v1084_v16, %v2591_v1 }
 0x12e   : > { %1273 = vst [vmem:[%s2820_s12 + $0x80] sm:$0xff] %v1145_v60  ;;  %1337 = vst [vmem:[%s2820_s12 + $0x280] sm:$0xff] %v1209_v26  ;;  %v1146_v0 = vadd.f32 %v1018_v39, %v2565_v55  ;;  %v1210_v31 = vadd.f32 %v1082_v41, %v2571_v57  ;;  %v1998_v11 = vpop.f32.mrb[20].mxu0  ;;  %v2062_v54 = vpop.f32.mrb[20].mxu1  ;;  %v3487_v39 = vld [vmem:[#allocation12_spill] sm:$0xff] }
 0x12f   : > { %1276 = vst [vmem:[%s2820_s12 + $0x98] sm:$0xff] %v1148_v28  ;;  %1340 = vst [vmem:[%s2820_s12 + $0x298] sm:$0xff] %v1212_v62  ;;  %v579_v56 = vadd.f32 %v1998_v11, %v2806_v12  ;;  %v835_v33 = vadd.f32 %v2062_v54, %v2806_v12  ;;  %v570_v9 = vpop.f32.mrb[21].mxu0  ;;  %v826_v18 = vpop.f32.mrb[21].mxu1  ;;  %v3488_v28 = vld [vmem:[#allocation14_spill] sm:$0xff]  ;;  %v3489_v11 = vld [vmem:[#allocation8_spill] sm:$0xff] }
 0x130   : > { %1274 = vst [vmem:[%s2820_s12 + $0x88] sm:$0xff] %v1146_v0  ;;  %1338 = vst [vmem:[%s2820_s12 + $0x288] sm:$0xff] %v1210_v31  ;;  %v571_v63 = vadd.f32 %v2806_v12, %v570_v9  ;;  %v827_v1 = vadd.f32 %v2806_v12, %v826_v18  ;;  %v1999_v20 = vpop.f32.mrb[22].mxu0  ;;  %v2063_v55 = vpop.f32.mrb[22].mxu1 }
 0x131   : > { %v1023_v34 = vmax.f32 %v579_v56, 0.0  ;;  %v1087_v57 = vmax.f32 %v835_v33, 0.0  ;;  %v582_v37 = vadd.f32 %v1999_v20, %v2806_v12  ;;  %v838_v58 = vadd.f32 %v2063_v55, %v2806_v12  ;;  %v573_v27 = vpop.f32.mrb[23].mxu0  ;;  %v829_v29 = vpop.f32.mrb[23].mxu1  ;;  %v3490_v56 = vld [vmem:[#allocation10_spill] sm:$0xff]  ;;  %v3492_v20 = vld [vmem:[#allocation15_spill] sm:$0xff] }
 0x132   : > { %v1021_v15 = vmax.f32 %v571_v63, 0.0  ;;  %v1085_v19 = vmax.f32 %v827_v1, 0.0  ;;  %v574_v17 = vadd.f32 %v2806_v12, %v573_v27  ;;  %v830_v21 = vadd.f32 %v2806_v12, %v829_v29  ;;  %v3491_v63 = vld [vmem:[#allocation13_spill] sm:$0xff] }
 0x133   : > { %v1151_v7 = vadd.f32 %v1023_v34, %v2614_v22  ;;  %v1215_v5 = vadd.f32 %v1087_v57, %v2620_v24  ;;  %v1024_v13 = vmax.f32 %v582_v37, 0.0  ;;  %v1088_v8 = vmax.f32 %v838_v58, 0.0  ;;  %v3485_v24 = vld [vmem:[#allocation3_spill] sm:$0xff]  ;;  %v3493_v34 = vld [vmem:[#allocation9_spill] sm:$0xff] }
 0x134   : > { %v1149_v61 = vadd.f32 %v1021_v15, %v2594_v2  ;;  %v1213_v52 = vadd.f32 %v1085_v19, %v3482_v50  ;;  %v1022_v36 = vmax.f32 %v574_v17, 0.0  ;;  %v1086_v47 = vmax.f32 %v830_v21, 0.0  ;;  %v3494_v37 = vld [vmem:[#allocation11_spill] sm:$0xff] }
 0x135   : > { %1279 = vst [vmem:[%s2820_s12 + $0xb0] sm:$0xff] %v1151_v7  ;;  %1343 = vst [vmem:[%s2820_s12 + $0x2b0] sm:$0xff] %v1215_v5  ;;  %v1152_v44 = vadd.f32 %v1024_v13, %v3483_v42  ;;  %v1216_v22 = vadd.f32 %v1088_v8, %v3484_v49 }
 0x136   : > { %1277 = vst [vmem:[%s2820_s12 + $0xa0] sm:$0xff] %v1149_v61  ;;  %1341 = vst [vmem:[%s2820_s12 + $0x2a0] sm:$0xff] %v1213_v52  ;;  %v1150_v10 = vadd.f32 %v1022_v36, %v3485_v24  ;;  %v1214_v51 = vadd.f32 %v1086_v47, %v3486_v23  ;;  %v2002_v53 = vpop.f32.mrb[24].mxu0  ;;  %v2066_v2 = vpop.f32.mrb[24].mxu1 }
 0x137   : > { %1280 = vst [vmem:[%s2820_s12 + $0xb8] sm:$0xff] %v1152_v44  ;;  %1344 = vst [vmem:[%s2820_s12 + $0x2b8] sm:$0xff] %v1216_v22  ;;  %v595_v3 = vadd.f32 %v2002_v53, %v2806_v12  ;;  %v851_v43 = vadd.f32 %v2066_v2, %v2806_v12  ;;  %v586_v59 = vpop.f32.mrb[25].mxu0  ;;  %v842_v45 = vpop.f32.mrb[25].mxu1 }
 0x138   : > { %1278 = vst [vmem:[%s2820_s12 + $0xa8] sm:$0xff] %v1150_v10  ;;  %1342 = vst [vmem:[%s2820_s12 + $0x2a8] sm:$0xff] %v1214_v51  ;;  %v587_v25 = vadd.f32 %v2806_v12, %v586_v59  ;;  %v843_v48 = vadd.f32 %v2806_v12, %v842_v45  ;;  %v2003_v46 = vpop.f32.mrb[26].mxu0  ;;  %v2067_v35 = vpop.f32.mrb[26].mxu1  ;;  %v3495_v10 = vld [vmem:[#allocation20_spill] sm:$0xff]  ;;  %v3496_v51 = vld [vmem:[#allocation22_spill] sm:$0xff] }
 0x139   : > { %v1027_v14 = vmax.f32 %v595_v3, 0.0  ;;  %v1091_v38 = vmax.f32 %v851_v43, 0.0  ;;  %v598_v40 = vadd.f32 %v2003_v46, %v2806_v12  ;;  %v854_v4 = vadd.f32 %v2067_v35, %v2806_v12  ;;  %v589_v6 = vpop.f32.mrb[27].mxu0  ;;  %v845_v30 = vpop.f32.mrb[27].mxu1  ;;  %v3497_v43 = vld [vmem:[#allocation16_spill] sm:$0xff]  ;;  %v3498_v45 = vld [vmem:[#allocation18_spill] sm:$0xff] }
 0x13a   : > { %v1025_v32 = vmax.f32 %v587_v25, 0.0  ;;  %v1089_v16 = vmax.f32 %v843_v48, 0.0  ;;  %v590_v60 = vadd.f32 %v2806_v12, %v589_v6  ;;  %v846_v26 = vadd.f32 %v2806_v12, %v845_v30  ;;  %v3499_v35 = vld [vmem:[#allocation21_spill] sm:$0xff]  ;;  %v3502_v30 = vld [vmem:[#allocation19_spill] sm:$0xff] }
 0x13b   : > { %v1155_v41 = vadd.f32 %v1027_v14, %v3487_v39  ;;  %v1219_v62 = vadd.f32 %v1091_v38, %v3488_v28  ;;  %v1028_v0 = vmax.f32 %v598_v40, 0.0  ;;  %v1092_v31 = vmax.f32 %v854_v4, 0.0  ;;  %v3500_v38 = vld [vmem:[#allocation23_spill] sm:$0xff]  ;;  %v3501_v4 = vld [vmem:[#allocation17_spill] sm:$0xff] }
 0x13c   : > { %v1153_v54 = vadd.f32 %v1025_v32, %v3489_v11  ;;  %v1217_v33 = vadd.f32 %v1089_v16, %v3490_v56  ;;  %v1026_v9 = vmax.f32 %v590_v60, 0.0  ;;  %v1090_v18 = vmax.f32 %v846_v26, 0.0 }
 0x13d   : > { %1283 = vst [vmem:[%s2820_s12 + $0xd0] sm:$0xff] %v1155_v41  ;;  %1347 = vst [vmem:[%s2820_s12 + $0x2d0] sm:$0xff] %v1219_v62  ;;  %v1156_v1 = vadd.f32 %v1028_v0, %v3491_v63  ;;  %v1220_v55 = vadd.f32 %v1092_v31, %v3492_v20 }
 0x13e   : > { %1281 = vst [vmem:[%s2820_s12 + $0xc0] sm:$0xff] %v1153_v54  ;;  %1345 = vst [vmem:[%s2820_s12 + $0x2c0] sm:$0xff] %v1217_v33  ;;  %v1154_v57 = vadd.f32 %v1026_v9, %v3493_v34  ;;  %v1218_v58 = vadd.f32 %v1090_v18, %v3494_v37  ;;  %v2006_v27 = vpop.f32.mrb[28].mxu0  ;;  %v2070_v29 = vpop.f32.mrb[28].mxu1 }
 0x13f   : > { %1284 = vst [vmem:[%s2820_s12 + $0xd8] sm:$0xff] %v1156_v1  ;;  %1348 = vst [vmem:[%s2820_s12 + $0x2d8] sm:$0xff] %v1220_v55  ;;  %v611_v15 = vadd.f32 %v2006_v27, %v2806_v12  ;;  %v867_v19 = vadd.f32 %v2070_v29, %v2806_v12  ;;  %v602_v17 = vpop.f32.mrb[29].mxu0  ;;  %v858_v21 = vpop.f32.mrb[29].mxu1 }
 0x140   : > { %1282 = vst [vmem:[%s2820_s12 + $0xc8] sm:$0xff] %v1154_v57  ;;  %1346 = vst [vmem:[%s2820_s12 + $0x2c8] sm:$0xff] %v1218_v58  ;;  %v603_v7 = vadd.f32 %v2806_v12, %v602_v17  ;;  %v859_v5 = vadd.f32 %v2806_v12, %v858_v21  ;;  %v2007_v13 = vpop.f32.mrb[30].mxu0  ;;  %v2071_v8 = vpop.f32.mrb[30].mxu1  ;;  %v3503_v57 = vld [vmem:[#allocation28_spill] sm:$0xff]  ;;  %v3504_v58 = vld [vmem:[#allocation30_spill] sm:$0xff] }
 0x141   : > { %v1031_v61 = vmax.f32 %v611_v15, 0.0  ;;  %v1095_v50 = vmax.f32 %v867_v19, 0.0  ;;  %v614_v52 = vadd.f32 %v2007_v13, %v2806_v12  ;;  %v870_v36 = vadd.f32 %v2071_v8, %v2806_v12  ;;  %v605_v47 = vpop.f32.mrb[31].mxu0  ;;  %v861_v42 = vpop.f32.mrb[31].mxu1  ;;  %v3505_v19 = vld [vmem:[#allocation24_spill] sm:$0xff]  ;;  %v3506_v21 = vld [vmem:[#allocation26_spill] sm:$0xff] }
 0x142   : > { %v1029_v44 = vmax.f32 %v603_v7, 0.0  ;;  %v1093_v49 = vmax.f32 %v859_v5, 0.0  ;;  %v606_v22 = vadd.f32 %v2806_v12, %v605_v47  ;;  %v862_v24 = vadd.f32 %v2806_v12, %v861_v42  ;;  %v3507_v8 = vld [vmem:[#allocation29_spill] sm:$0xff]  ;;  %v3510_v42 = vld [vmem:[#allocation27_spill] sm:$0xff] }
 0x143   : > { %v1159_v23 = vadd.f32 %v1031_v61, %v3495_v10  ;;  %v1223_v53 = vadd.f32 %v1095_v50, %v3496_v51  ;;  %v1032_v2 = vmax.f32 %v614_v52, 0.0  ;;  %v1096_v3 = vmax.f32 %v870_v36, 0.0  ;;  %v3508_v50 = vld [vmem:[#allocation31_spill] sm:$0xff]  ;;  %v3509_v36 = vld [vmem:[#allocation25_spill] sm:$0xff] }
 0x144   : > { %v1157_v59 = vadd.f32 %v1029_v44, %v3497_v43  ;;  %v1221_v25 = vadd.f32 %v1093_v49, %v3498_v45  ;;  %v1030_v48 = vmax.f32 %v606_v22, 0.0  ;;  %v1094_v46 = vmax.f32 %v862_v24, 0.0 }
 0x145   : > { %1287 = vst [vmem:[%s2820_s12 + $0xf0] sm:$0xff] %v1159_v23  ;;  %1351 = vst [vmem:[%s2820_s12 + $0x2f0] sm:$0xff] %v1223_v53  ;;  %v1160_v14 = vadd.f32 %v1032_v2, %v3499_v35  ;;  %v1224_v40 = vadd.f32 %v1096_v3, %v3500_v38 }
 0x146   : > { %1285 = vst [vmem:[%s2820_s12 + $0xe0] sm:$0xff] %v1157_v59  ;;  %1349 = vst [vmem:[%s2820_s12 + $0x2e0] sm:$0xff] %v1221_v25  ;;  %v1158_v6 = vadd.f32 %v1030_v48, %v3501_v4  ;;  %v1222_v32 = vadd.f32 %v1094_v46, %v3502_v30  ;;  %v2010_v16 = vpop.f32.mrb[32].mxu0  ;;  %v2074_v60 = vpop.f32.mrb[32].mxu1 }
 0x147   : > { %1288 = vst [vmem:[%s2820_s12 + $0xf8] sm:$0xff] %v1160_v14  ;;  %1352 = vst [vmem:[%s2820_s12 + $0x2f8] sm:$0xff] %v1224_v40  ;;  %v627_v26 = vadd.f32 %v2010_v16, %v2806_v12  ;;  %v883_v39 = vadd.f32 %v2074_v60, %v2806_v12  ;;  %v618_v41 = vpop.f32.mrb[33].mxu0  ;;  %v874_v28 = vpop.f32.mrb[33].mxu1 }
 0x148   : > { %1286 = vst [vmem:[%s2820_s12 + $0xe8] sm:$0xff] %v1158_v6  ;;  %1350 = vst [vmem:[%s2820_s12 + $0x2e8] sm:$0xff] %v1222_v32  ;;  %v619_v62 = vadd.f32 %v2806_v12, %v618_v41  ;;  %v875_v0 = vadd.f32 %v2806_v12, %v874_v28  ;;  %v2011_v31 = vpop.f32.mrb[34].mxu0  ;;  %v2075_v11 = vpop.f32.mrb[34].mxu1  ;;  %v3511_v6 = vld [vmem:[#allocation34_spill] sm:$0xff]  ;;  %v3512_v32 = vld [vmem:[#allocation36_spill] sm:$0xff] }
 0x149   : > { %v1035_v54 = vmax.f32 %v627_v26, 0.0  ;;  %v1099_v56 = vmax.f32 %v883_v39, 0.0  ;;  %v630_v33 = vadd.f32 %v2011_v31, %v2806_v12  ;;  %v886_v9 = vadd.f32 %v2075_v11, %v2806_v12  ;;  %v621_v18 = vpop.f32.mrb[35].mxu0  ;;  %v877_v63 = vpop.f32.mrb[35].mxu1  ;;  %v3513_v39 = vld [vmem:[#allocation32_spill] sm:$0xff]  ;;  %v3514_v28 = vld [vmem:[#allocation33_spill] sm:$0xff] }
 0x14a   : > { %v1033_v1 = vmax.f32 %v619_v62, 0.0  ;;  %v1097_v20 = vmax.f32 %v875_v0, 0.0  ;;  %v622_v55 = vadd.f32 %v2806_v12, %v621_v18  ;;  %v878_v34 = vadd.f32 %v2806_v12, %v877_v63  ;;  %v3515_v11 = vld [vmem:[#allocation35_spill] sm:$0xff]  ;;  %v2217_v63 = vld [vmem:[%s2420_s5 + $0x328] sm:$0xff] }
 0x14b   : > { %v1163_v37 = vadd.f32 %v1035_v54, %v3503_v57  ;;  %v1227_v27 = vadd.f32 %v1099_v56, %v3504_v58  ;;  %v1036_v29 = vmax.f32 %v630_v33, 0.0  ;;  %v1100_v15 = vmax.f32 %v886_v9, 0.0  ;;  %v3516_v56 = vld [vmem:[#allocation37_spill] sm:$0xff]  ;;  %v2216_v9 = vld [vmem:[%s2420_s5 + $0x128] sm:$0xff] }
 0x14c   : > { %v1161_v17 = vadd.f32 %v1033_v1, %v3505_v19  ;;  %v1225_v7 = vadd.f32 %v1097_v20, %v3506_v21  ;;  %v1034_v5 = vmax.f32 %v622_v55, 0.0  ;;  %v1098_v13 = vmax.f32 %v878_v34, 0.0 }
 0x14d   : > { %1291 = vst [vmem:[%s2820_s12 + $0x110] sm:$0xff] %v1163_v37  ;;  %1355 = vst [vmem:[%s2820_s12 + $0x310] sm:$0xff] %v1227_v27  ;;  %v1164_v61 = vadd.f32 %v1036_v29, %v3507_v8  ;;  %v1228_v52 = vadd.f32 %v1100_v15, %v3508_v50 }
 0x14e   : > { %1289 = vst [vmem:[%s2820_s12 + $0x100] sm:$0xff] %v1161_v17  ;;  %1353 = vst [vmem:[%s2820_s12 + $0x300] sm:$0xff] %v1225_v7  ;;  %v1162_v47 = vadd.f32 %v1034_v5, %v3509_v36  ;;  %v1226_v44 = vadd.f32 %v1098_v13, %v3510_v42  ;;  %v2014_v49 = vpop.f32.mrb[36].mxu0  ;;  %v2078_v22 = vpop.f32.mrb[36].mxu1 }
 0x14f   : > { %1292 = vst [vmem:[%s2820_s12 + $0x118] sm:$0xff] %v1164_v61  ;;  %1356 = vst [vmem:[%s2820_s12 + $0x318] sm:$0xff] %v1228_v52  ;;  %v643_v24 = vadd.f32 %v2014_v49, %v2806_v12  ;;  %v899_v10 = vadd.f32 %v2078_v22, %v2806_v12  ;;  %v634_v23 = vpop.f32.mrb[37].mxu0  ;;  %v890_v51 = vpop.f32.mrb[37].mxu1 }
 0x150   : > { %1290 = vst [vmem:[%s2820_s12 + $0x108] sm:$0xff] %v1162_v47  ;;  %1354 = vst [vmem:[%s2820_s12 + $0x308] sm:$0xff] %v1226_v44  ;;  %v635_v53 = vadd.f32 %v2806_v12, %v634_v23  ;;  %v891_v2 = vadd.f32 %v2806_v12, %v890_v51  ;;  %v2015_v3 = vpop.f32.mrb[38].mxu0  ;;  %v2079_v43 = vpop.f32.mrb[38].mxu1  ;;  %v2218_v47 = vld [vmem:[%s2420_s5 + $0x150] sm:$0xff]  ;;  %v3517_v44 = vld [vmem:[#allocation38_spill] sm:$0xff] }
 0x151   : > { %v1039_v59 = vmax.f32 %v643_v24, 0.0  ;;  %v1103_v45 = vmax.f32 %v899_v10, 0.0  ;;  %v646_v25 = vadd.f32 %v2015_v3, %v2806_v12  ;;  %v902_v48 = vadd.f32 %v2079_v43, %v2806_v12  ;;  %v637_v46 = vpop.f32.mrb[39].mxu0  ;;  %v893_v35 = vpop.f32.mrb[39].mxu1  ;;  %v2219_v10 = vld [vmem:[%s2420_s5 + $0x140] sm:$0xff]  ;;  %v2221_v43 = vld [vmem:[%s2420_s5 + $0x158] sm:$0xff] }
 0x152   : > { %v1037_v14 = vmax.f32 %v635_v53, 0.0  ;;  %v1101_v38 = vmax.f32 %v891_v2, 0.0  ;;  %v638_v40 = vadd.f32 %v2806_v12, %v637_v46  ;;  %v894_v4 = vadd.f32 %v2806_v12, %v893_v35  ;;  %v2220_v51 = vld [vmem:[%s2420_s5 + $0x340] sm:$0xff]  ;;  %v2224_v35 = vld [vmem:[%s2420_s5 + $0x348] sm:$0xff] }
 0x153   : > { %v1167_v30 = vadd.f32 %v1039_v59, %v3511_v6  ;;  %v1231_v16 = vadd.f32 %v1103_v45, %v3512_v32  ;;  %v1040_v60 = vmax.f32 %v646_v25, 0.0  ;;  %v1104_v26 = vmax.f32 %v902_v48, 0.0  ;;  %v2222_v45 = vld [vmem:[%s2420_s5 + $0x358] sm:$0xff]  ;;  %v2223_v48 = vld [vmem:[%s2420_s5 + $0x148] sm:$0xff] }
 0x154   : > { %v1165_v41 = vadd.f32 %v1037_v14, %v3513_v39  ;;  %v1229_v62 = vadd.f32 %v1101_v38, %v3514_v28  ;;  %v1038_v0 = vmax.f32 %v638_v40, 0.0  ;;  %v1102_v31 = vmax.f32 %v894_v4, 0.0 }
 0x155   : > { %1295 = vst [vmem:[%s2820_s12 + $0x130] sm:$0xff] %v1167_v30  ;;  %1359 = vst [vmem:[%s2820_s12 + $0x330] sm:$0xff] %v1231_v16  ;;  %v1168_v54 = vadd.f32 %v1040_v60, %v3515_v11  ;;  %v1232_v33 = vadd.f32 %v1104_v26, %v3516_v56 }
 0x156   : > { %1293 = vst [vmem:[%s2820_s12 + $0x120] sm:$0xff] %v1165_v41  ;;  %1357 = vst [vmem:[%s2820_s12 + $0x320] sm:$0xff] %v1229_v62  ;;  %v1166_v18 = vadd.f32 %v2216_v9, %v1038_v0  ;;  %v1230_v1 = vadd.f32 %v2217_v63, %v1102_v31  ;;  %v2018_v20 = vpop.f32.mrb[40].mxu0  ;;  %v2082_v55 = vpop.f32.mrb[40].mxu1 }
 0x157   : > { %1296 = vst [vmem:[%s2820_s12 + $0x138] sm:$0xff] %v1168_v54  ;;  %1360 = vst [vmem:[%s2820_s12 + $0x338] sm:$0xff] %v1232_v33  ;;  %v659_v34 = vadd.f32 %v2018_v20, %v2806_v12  ;;  %v915_v57 = vadd.f32 %v2082_v55, %v2806_v12  ;;  %v650_v37 = vpop.f32.mrb[41].mxu0  ;;  %v906_v58 = vpop.f32.mrb[41].mxu1 }
 0x158   : > { %1294 = vst [vmem:[%s2820_s12 + $0x128] sm:$0xff] %v1166_v18  ;;  %1358 = vst [vmem:[%s2820_s12 + $0x328] sm:$0xff] %v1230_v1  ;;  %v651_v27 = vadd.f32 %v2806_v12, %v650_v37  ;;  %v907_v29 = vadd.f32 %v2806_v12, %v906_v58  ;;  %v2019_v15 = vpop.f32.mrb[42].mxu0  ;;  %v2083_v19 = vpop.f32.mrb[42].mxu1  ;;  %v2225_v18 = vld [vmem:[%s2420_s5 + $0x170] sm:$0xff]  ;;  %v2228_v58 = vld [vmem:[%s2420_s5 + $0x360] sm:$0xff] }
 0x159   : > { %v1043_v17 = vmax.f32 %v659_v34, 0.0  ;;  %v1107_v21 = vmax.f32 %v915_v57, 0.0  ;;  %v662_v7 = vadd.f32 %v2019_v15, %v2806_v12  ;;  %v918_v5 = vadd.f32 %v2083_v19, %v2806_v12  ;;  %v653_v13 = vpop.f32.mrb[43].mxu0  ;;  %v909_v8 = vpop.f32.mrb[43].mxu1  ;;  %v2226_v1 = vld [vmem:[%s2420_s5 + $0x370] sm:$0xff]  ;;  %v2227_v57 = vld [vmem:[%s2420_s5 + $0x160] sm:$0xff] }
 0x15a   : > { %v1041_v61 = vmax.f32 %v651_v27, 0.0  ;;  %v1105_v50 = vmax.f32 %v907_v29, 0.0  ;;  %v654_v52 = vadd.f32 %v2806_v12, %v653_v13  ;;  %v910_v36 = vadd.f32 %v2806_v12, %v909_v8  ;;  %v2229_v19 = vld [vmem:[%s2420_s5 + $0x178] sm:$0xff]  ;;  %v2232_v8 = vld [vmem:[%s2420_s5 + $0x368] sm:$0xff] }
 0x15b   : > { %v1171_v42 = vadd.f32 %v2218_v47, %v1043_v17  ;;  %v1235_v49 = vadd.f32 %v1107_v21, %v3517_v44  ;;  %v1044_v22 = vmax.f32 %v662_v7, 0.0  ;;  %v1108_v24 = vmax.f32 %v918_v5, 0.0  ;;  %v2230_v21 = vld [vmem:[%s2420_s5 + $0x378] sm:$0xff]  ;;  %v2231_v5 = vld [vmem:[%s2420_s5 + $0x168] sm:$0xff] }
 0x15c   : > { %v1169_v23 = vadd.f32 %v2219_v10, %v1041_v61  ;;  %v1233_v53 = vadd.f32 %v2220_v51, %v1105_v50  ;;  %v1042_v2 = vmax.f32 %v654_v52, 0.0  ;;  %v1106_v3 = vmax.f32 %v910_v36, 0.0 }
 0x15d   : > { %1299 = vst [vmem:[%s2820_s12 + $0x150] sm:$0xff] %v1171_v42  ;;  %1363 = vst [vmem:[%s2820_s12 + $0x350] sm:$0xff] %v1235_v49  ;;  %v1172_v59 = vadd.f32 %v2221_v43, %v1044_v22  ;;  %v1236_v25 = vadd.f32 %v2222_v45, %v1108_v24 }
 0x15e   : > { %1297 = vst [vmem:[%s2820_s12 + $0x140] sm:$0xff] %v1169_v23  ;;  %1361 = vst [vmem:[%s2820_s12 + $0x340] sm:$0xff] %v1233_v53  ;;  %v1170_v46 = vadd.f32 %v2223_v48, %v1042_v2  ;;  %v1234_v14 = vadd.f32 %v2224_v35, %v1106_v3  ;;  %v2022_v38 = vpop.f32.mrb[44].mxu0  ;;  %v2086_v40 = vpop.f32.mrb[44].mxu1 }
 0x15f   : > { %1300 = vst [vmem:[%s2820_s12 + $0x158] sm:$0xff] %v1172_v59  ;;  %1364 = vst [vmem:[%s2820_s12 + $0x358] sm:$0xff] %v1236_v25  ;;  %v675_v4 = vadd.f32 %v2022_v38, %v2806_v12  ;;  %v931_v6 = vadd.f32 %v2086_v40, %v2806_v12  ;;  %v666_v30 = vpop.f32.mrb[45].mxu0  ;;  %v922_v32 = vpop.f32.mrb[45].mxu1 }
 0x160   : > { %1298 = vst [vmem:[%s2820_s12 + $0x148] sm:$0xff] %v1170_v46  ;;  %1362 = vst [vmem:[%s2820_s12 + $0x348] sm:$0xff] %v1234_v14  ;;  %v667_v16 = vadd.f32 %v2806_v12, %v666_v30  ;;  %v923_v60 = vadd.f32 %v2806_v12, %v922_v32  ;;  %v2023_v26 = vpop.f32.mrb[46].mxu0  ;;  %v2087_v39 = vpop.f32.mrb[46].mxu1  ;;  %v2233_v46 = vld [vmem:[%s2420_s5 + $0x190] sm:$0xff]  ;;  %v2236_v32 = vld [vmem:[%s2420_s5 + $0x380] sm:$0xff] }
 0x161   : > { %v1047_v41 = vmax.f32 %v675_v4, 0.0  ;;  %v1111_v28 = vmax.f32 %v931_v6, 0.0  ;;  %v678_v62 = vadd.f32 %v2023_v26, %v2806_v12  ;;  %v934_v0 = vadd.f32 %v2087_v39, %v2806_v12  ;;  %v669_v31 = vpop.f32.mrb[47].mxu0  ;;  %v925_v11 = vpop.f32.mrb[47].mxu1  ;;  %v2234_v14 = vld [vmem:[%s2420_s5 + $0x390] sm:$0xff]  ;;  %v2235_v6 = vld [vmem:[%s2420_s5 + $0x180] sm:$0xff] }
 0x162   : > { %v1045_v54 = vmax.f32 %v667_v16, 0.0  ;;  %v1109_v56 = vmax.f32 %v923_v60, 0.0  ;;  %v670_v33 = vadd.f32 %v2806_v12, %v669_v31  ;;  %v926_v9 = vadd.f32 %v2806_v12, %v925_v11  ;;  %v2240_v31 = vld [vmem:[%s2420_s5 + $0x388] sm:$0xff] }
 0x163   : > { %v1175_v63 = vadd.f32 %v2225_v18, %v1047_v41  ;;  %v1239_v20 = vadd.f32 %v2226_v1, %v1111_v28  ;;  %v1048_v55 = vmax.f32 %v678_v62, 0.0  ;;  %v1112_v34 = vmax.f32 %v934_v0, 0.0  ;;  %v2238_v41 = vld [vmem:[%s2420_s5 + $0x398] sm:$0xff]  ;;  %v2239_v62 = vld [vmem:[%s2420_s5 + $0x188] sm:$0xff] }
 0x164   : > { %v1173_v37 = vadd.f32 %v2227_v57, %v1045_v54  ;;  %v1237_v27 = vadd.f32 %v2228_v58, %v1109_v56  ;;  %v1046_v29 = vmax.f32 %v670_v33, 0.0  ;;  %v1110_v15 = vmax.f32 %v926_v9, 0.0  ;;  %v3123_v33 = vld [vmem:[%s3407_s2] ss:$0 sm:$0xff] }
 0x165   : > { %1303 = vst [vmem:[%s2820_s12 + $0x170] sm:$0xff] %v1175_v63  ;;  %1367 = vst [vmem:[%s2820_s12 + $0x370] sm:$0xff] %v1239_v20  ;;  %v1176_v17 = vadd.f32 %v2229_v19, %v1048_v55  ;;  %v1240_v7 = vadd.f32 %v2230_v21, %v1112_v34 }
 0x166   : > { %1301 = vst [vmem:[%s2820_s12 + $0x160] sm:$0xff] %v1173_v37  ;;  %1365 = vst [vmem:[%s2820_s12 + $0x360] sm:$0xff] %v1237_v27  ;;  %v1174_v13 = vadd.f32 %v2231_v5, %v1046_v29  ;;  %v1238_v61 = vadd.f32 %v2232_v8, %v1110_v15  ;;  %v2026_v50 = vpop.f32.mrb[48].mxu0  ;;  %v2090_v52 = vpop.f32.mrb[48].mxu1 }
 0x167   : > { %1304 = vst [vmem:[%s2820_s12 + $0x178] sm:$0xff] %v1176_v17  ;;  %1368 = vst [vmem:[%s2820_s12 + $0x378] sm:$0xff] %v1240_v7  ;;  %v691_v36 = vadd.f32 %v2026_v50, %v2806_v12  ;;  %v947_v47 = vadd.f32 %v2090_v52, %v2806_v12  ;;  %v682_v42 = vpop.f32.mrb[49].mxu0  ;;  %v938_v44 = vpop.f32.mrb[49].mxu1 }
 0x168   : > { %1302 = vst [vmem:[%s2820_s12 + $0x168] sm:$0xff] %v1174_v13  ;;  %1366 = vst [vmem:[%s2820_s12 + $0x368] sm:$0xff] %v1238_v61  ;;  %v683_v49 = vadd.f32 %v2806_v12, %v682_v42  ;;  %v939_v22 = vadd.f32 %v2806_v12, %v938_v44  ;;  %v2027_v24 = vpop.f32.mrb[50].mxu0  ;;  %v2091_v10 = vpop.f32.mrb[50].mxu1  ;;  %v2242_v13 = vld [vmem:[%s2420_s5 + $0x1b0] sm:$0xff]  ;;  %v2245_v44 = vld [vmem:[%s2420_s5 + $0x3a0] sm:$0xff] }
 0x169   : > { %v1051_v23 = vmax.f32 %v691_v36, 0.0  ;;  %v1115_v51 = vmax.f32 %v947_v47, 0.0  ;;  %v694_v53 = vadd.f32 %v2027_v24, %v2806_v12  ;;  %v950_v2 = vadd.f32 %v2091_v10, %v2806_v12  ;;  %v685_v3 = vpop.f32.mrb[51].mxu0  ;;  %v941_v43 = vpop.f32.mrb[51].mxu1  ;;  %v2243_v61 = vld [vmem:[%s2420_s5 + $0x3b0] sm:$0xff]  ;;  %v2244_v47 = vld [vmem:[%s2420_s5 + $0x1a0] sm:$0xff] }
 0x16a   : > { %v1049_v59 = vmax.f32 %v683_v49, 0.0  ;;  %v1113_v45 = vmax.f32 %v939_v22, 0.0  ;;  %v686_v25 = vadd.f32 %v2806_v12, %v685_v3  ;;  %v942_v48 = vadd.f32 %v2806_v12, %v941_v43  ;;  %v2237_v12 = vld [vmem:[%s2420_s5 + $0x198] sm:$0xff]  ;;  %v2249_v43 = vld [vmem:[%s2420_s5 + $0x3a8] sm:$0xff] }
 0x16b   : > { %v1179_v35 = vadd.f32 %v2233_v46, %v1051_v23  ;;  %v1243_v38 = vadd.f32 %v2234_v14, %v1115_v51  ;;  %v1052_v40 = vmax.f32 %v694_v53, 0.0  ;;  %v1116_v4 = vmax.f32 %v950_v2, 0.0  ;;  %v2246_v10 = vld [vmem:[%s2420_s5 + $0x1b8] sm:$0xff]  ;;  %v2248_v2 = vld [vmem:[%s2420_s5 + $0x1a8] sm:$0xff] }
 0x16c   : > { %v1177_v30 = vadd.f32 %v2235_v6, %v1049_v59  ;;  %v1241_v16 = vadd.f32 %v2236_v32, %v1113_v45  ;;  %v1050_v60 = vmax.f32 %v686_v25, 0.0  ;;  %v1114_v26 = vmax.f32 %v942_v48, 0.0  ;;  %v2247_v51 = vld [vmem:[%s2420_s5 + $0x3b8] sm:$0xff] }
 0x16d   : > { %1307 = vst [vmem:[%s2820_s12 + $0x190] sm:$0xff] %v1179_v35  ;;  %1371 = vst [vmem:[%s2820_s12 + $0x390] sm:$0xff] %v1243_v38  ;;  %v1180_v39 = vadd.f32 %v2237_v12, %v1052_v40  ;;  %v1244_v28 = vadd.f32 %v2238_v41, %v1116_v4 }
 0x16e   : > { %1305 = vst [vmem:[%s2820_s12 + $0x180] sm:$0xff] %v1177_v30  ;;  %1369 = vst [vmem:[%s2820_s12 + $0x380] sm:$0xff] %v1241_v16  ;;  %v1178_v0 = vadd.f32 %v2239_v62, %v1050_v60  ;;  %v1242_v11 = vadd.f32 %v2240_v31, %v1114_v26  ;;  %v2030_v54 = vpop.f32.mrb[52].mxu0  ;;  %v2094_v56 = vpop.f32.mrb[52].mxu1 }
 0x16f   : > { %1308 = vst [vmem:[%s2820_s12 + $0x198] sm:$0xff] %v1180_v39  ;;  %1372 = vst [vmem:[%s2820_s12 + $0x398] sm:$0xff] %v1244_v28  ;;  %v707_v9 = vadd.f32 %v3123_v33, %v2030_v54  ;;  %v963_v18 = vadd.f32 %v3123_v33, %v2094_v56  ;;  %v698_v63 = vpop.f32.mrb[53].mxu0  ;;  %v954_v1 = vpop.f32.mrb[53].mxu1 }
 0x170   : > { %1306 = vst [vmem:[%s2820_s12 + $0x188] sm:$0xff] %v1178_v0  ;;  %1370 = vst [vmem:[%s2820_s12 + $0x388] sm:$0xff] %v1242_v11  ;;  %v699_v20 = vadd.f32 %v3123_v33, %v698_v63  ;;  %v955_v55 = vadd.f32 %v3123_v33, %v954_v1  ;;  %v2031_v34 = vpop.f32.mrb[54].mxu0  ;;  %v2095_v57 = vpop.f32.mrb[54].mxu1  ;;  %v2250_v0 = vld [vmem:[%s2420_s5 + $0x1d0] sm:$0xff]  ;;  %v2253_v1 = vld [vmem:[%s2420_s5 + $0x3c0] sm:$0xff] }
 0x171   : > { %v1055_v37 = vmax.f32 %v707_v9, 0.0  ;;  %v1119_v58 = vmax.f32 %v963_v18, 0.0  ;;  %v710_v27 = vadd.f32 %v3123_v33, %v2031_v34  ;;  %v966_v29 = vadd.f32 %v3123_v33, %v2095_v57  ;;  %v701_v15 = vpop.f32.mrb[55].mxu0  ;;  %v957_v19 = vpop.f32.mrb[55].mxu1  ;;  %v2251_v11 = vld [vmem:[%s2420_s5 + $0x3d0] sm:$0xff]  ;;  %v2252_v18 = vld [vmem:[%s2420_s5 + $0x1c0] sm:$0xff] }
 0x172   : > { %v1053_v17 = vmax.f32 %v699_v20, 0.0  ;;  %v1117_v21 = vmax.f32 %v955_v55, 0.0  ;;  %v702_v7 = vadd.f32 %v3123_v33, %v701_v15  ;;  %v958_v5 = vadd.f32 %v3123_v33, %v957_v19  ;;  %v2254_v57 = vld [vmem:[%s2420_s5 + $0x1d8] sm:$0xff]  ;;  %v2257_v19 = vld [vmem:[%s2420_s5 + $0x3c8] sm:$0xff] }
 0x173   : > { %v1183_v8 = vadd.f32 %v2242_v13, %v1055_v37  ;;  %v1247_v50 = vadd.f32 %v2243_v61, %v1119_v58  ;;  %v1056_v52 = vmax.f32 %v710_v27, 0.0  ;;  %v1120_v36 = vmax.f32 %v966_v29, 0.0  ;;  %v2255_v58 = vld [vmem:[%s2420_s5 + $0x3d8] sm:$0xff]  ;;  %v2256_v29 = vld [vmem:[%s2420_s5 + $0x1c8] sm:$0xff] }
 0x174   : > { %v1181_v42 = vadd.f32 %v2244_v47, %v1053_v17  ;;  %v1245_v49 = vadd.f32 %v2245_v44, %v1117_v21  ;;  %v1054_v22 = vmax.f32 %v702_v7, 0.0  ;;  %v1118_v24 = vmax.f32 %v958_v5, 0.0 }
 0x175   : > { %1311 = vst [vmem:[%s2820_s12 + $0x1b0] sm:$0xff] %v1183_v8  ;;  %1375 = vst [vmem:[%s2820_s12 + $0x3b0] sm:$0xff] %v1247_v50  ;;  %v1184_v23 = vadd.f32 %v2246_v10, %v1056_v52  ;;  %v1248_v53 = vadd.f32 %v2247_v51, %v1120_v36 }
 0x176   : > { %1309 = vst [vmem:[%s2820_s12 + $0x1a0] sm:$0xff] %v1181_v42  ;;  %1373 = vst [vmem:[%s2820_s12 + $0x3a0] sm:$0xff] %v1245_v49  ;;  %v1182_v3 = vadd.f32 %v2248_v2, %v1054_v22  ;;  %v1246_v59 = vadd.f32 %v2249_v43, %v1118_v24  ;;  %v2034_v45 = vpop.f32.mrb[56].mxu0  ;;  %v2098_v25 = vpop.f32.mrb[56].mxu1 }
 0x177   : > { %1312 = vst [vmem:[%s2820_s12 + $0x1b8] sm:$0xff] %v1184_v23  ;;  %1376 = vst [vmem:[%s2820_s12 + $0x3b8] sm:$0xff] %v1248_v53  ;;  %v723_v48 = vadd.f32 %v3123_v33, %v2034_v45  ;;  %v979_v46 = vadd.f32 %v3123_v33, %v2098_v25  ;;  %v714_v35 = vpop.f32.mrb[57].mxu0  ;;  %v970_v14 = vpop.f32.mrb[57].mxu1 }
 0x178   : > { %1310 = vst [vmem:[%s2820_s12 + $0x1a8] sm:$0xff] %v1182_v3  ;;  %1374 = vst [vmem:[%s2820_s12 + $0x3a8] sm:$0xff] %v1246_v59  ;;  %v715_v38 = vadd.f32 %v3123_v33, %v714_v35  ;;  %v971_v40 = vadd.f32 %v3123_v33, %v970_v14  ;;  %v2035_v4 = vpop.f32.mrb[58].mxu0  ;;  %v2099_v6 = vpop.f32.mrb[58].mxu1  ;;  %v2258_v3 = vld [vmem:[%s2420_s5 + $0x1f0] sm:$0xff]  ;;  %v2261_v14 = vld [vmem:[%s2420_s5 + $0x3e0] sm:$0xff] }
 0x179   : > { %v1059_v30 = vmax.f32 %v723_v48, 0.0  ;;  %v1123_v32 = vmax.f32 %v979_v46, 0.0  ;;  %v726_v16 = vadd.f32 %v3123_v33, %v2035_v4  ;;  %v982_v60 = vadd.f32 %v3123_v33, %v2099_v6  ;;  %v717_v26 = vpop.f32.mrb[59].mxu0  ;;  %v973_v12 = vpop.f32.mrb[59].mxu1  ;;  %v2259_v59 = vld [vmem:[%s2420_s5 + $0x3f0] sm:$0xff]  ;;  %v2260_v46 = vld [vmem:[%s2420_s5 + $0x1e0] sm:$0xff] }
 0x17a   : > { %v1057_v39 = vmax.f32 %v715_v38, 0.0  ;;  %v1121_v41 = vmax.f32 %v971_v40, 0.0  ;;  %v718_v28 = vadd.f32 %v3123_v33, %v717_v26  ;;  %v974_v62 = vadd.f32 %v3123_v33, %v973_v12  ;;  %v2262_v4 = vld [vmem:[%s2420_s5 + $0x1f8] sm:$0xff]  ;;  %v2265_v26 = vld [vmem:[%s2420_s5 + $0x3e8] sm:$0xff] }
 0x17b   : > { %v1187_v31 = vadd.f32 %v2250_v0, %v1059_v30  ;;  %v1251_v54 = vadd.f32 %v2251_v11, %v1123_v32  ;;  %v1060_v56 = vmax.f32 %v726_v16, 0.0  ;;  %v1124_v9 = vmax.f32 %v982_v60, 0.0  ;;  %v2263_v30 = vld [vmem:[%s2420_s5 + $0x3f8] sm:$0xff]  ;;  %v2264_v16 = vld [vmem:[%s2420_s5 + $0x1e8] sm:$0xff] }
 0x17c   : > { %v1185_v63 = vadd.f32 %v2252_v18, %v1057_v39  ;;  %v1249_v20 = vadd.f32 %v2253_v1, %v1121_v41  ;;  %v1058_v55 = vmax.f32 %v718_v28, 0.0  ;;  %v1122_v34 = vmax.f32 %v974_v62, 0.0 }
 0x17d   : > { %1315 = vst [vmem:[%s2820_s12 + $0x1d0] sm:$0xff] %v1187_v31  ;;  %1379 = vst [vmem:[%s2820_s12 + $0x3d0] sm:$0xff] %v1251_v54  ;;  %v1188_v37 = vadd.f32 %v2254_v57, %v1060_v56  ;;  %v1252_v27 = vadd.f32 %v2255_v58, %v1124_v9 }
 0x17e   : > { %1313 = vst [vmem:[%s2820_s12 + $0x1c0] sm:$0xff] %v1185_v63  ;;  %1377 = vst [vmem:[%s2820_s12 + $0x3c0] sm:$0xff] %v1249_v20  ;;  %v1186_v15 = vadd.f32 %v2256_v29, %v1058_v55  ;;  %v1250_v17 = vadd.f32 %v2257_v19, %v1122_v34  ;;  %v2038_v21 = vpop.f32.mrb[60].mxu0  ;;  %v2102_v7 = vpop.f32.mrb[60].mxu1 }
 0x17f   : > { %1316 = vst [vmem:[%s2820_s12 + $0x1d8] sm:$0xff] %v1188_v37  ;;  %1380 = vst [vmem:[%s2820_s12 + $0x3d8] sm:$0xff] %v1252_v27  ;;  %v739_v5 = vadd.f32 %v3123_v33, %v2038_v21  ;;  %v995_v13 = vadd.f32 %v3123_v33, %v2102_v7  ;;  %v730_v8 = vpop.f32.mrb[61].mxu0  ;;  %v986_v61 = vpop.f32.mrb[61].mxu1 }
 0x180   : > { %1314 = vst [vmem:[%s2820_s12 + $0x1c8] sm:$0xff] %v1186_v15  ;;  %1378 = vst [vmem:[%s2820_s12 + $0x3c8] sm:$0xff] %v1250_v17  ;;  %v731_v50 = vadd.f32 %v3123_v33, %v730_v8  ;;  %v987_v52 = vadd.f32 %v3123_v33, %v986_v61  ;;  %v2039_v36 = vpop.f32.mrb[62].mxu0  ;;  %v2103_v47 = vpop.f32.mrb[62].mxu1 }
 0x181   : > { %v1063_v42 = vmax.f32 %v739_v5, 0.0  ;;  %v1127_v44 = vmax.f32 %v995_v13, 0.0  ;;  %v742_v49 = vadd.f32 %v3123_v33, %v2039_v36  ;;  %v998_v22 = vadd.f32 %v3123_v33, %v2103_v47  ;;  %v733_v24 = vpop.f32.mrb[63].mxu0  ;;  %v989_v10 = vpop.f32.mrb[63].mxu1 }
 0x182   : > { %v1061_v23 = vmax.f32 %v731_v50, 0.0  ;;  %v1125_v51 = vmax.f32 %v987_v52, 0.0  ;;  %v734_v53 = vadd.f32 %v3123_v33, %v733_v24  ;;  %v990_v2 = vadd.f32 %v3123_v33, %v989_v10  ;;  %1391 = sbr.rel (!%p2399_p4) target bundleno = 465 (0x1d1), region = 36 }
 0x183   : > { %v1191_v43 = vadd.f32 %v2258_v3, %v1063_v42  ;;  %v1255_v45 = vadd.f32 %v2259_v59, %v1127_v44  ;;  %v1064_v25 = vmax.f32 %v742_v49, 0.0  ;;  %v1128_v48 = vmax.f32 %v998_v22, 0.0 }
 0x184   : > { %v1189_v35 = vadd.f32 %v2260_v46, %v1061_v23  ;;  %v1253_v38 = vadd.f32 %v2261_v14, %v1125_v51  ;;  %v1062_v40 = vmax.f32 %v734_v53, 0.0  ;;  %v1126_v33 = vmax.f32 %v990_v2, 0.0 }
 0x185   : > { %1319 = vst [vmem:[%s2820_s12 + $0x1f0] sm:$0xff] %v1191_v43  ;;  %1383 = vst [vmem:[%s2820_s12 + $0x3f0] sm:$0xff] %v1255_v45  ;;  %v1192_v6 = vadd.f32 %v2262_v4, %v1064_v25  ;;  %v1256_v32 = vadd.f32 %v2263_v30, %v1128_v48 }
 0x186   : > { %1317 = vst [vmem:[%s2820_s12 + $0x1e0] sm:$0xff] %v1189_v35  ;;  %1381 = vst [vmem:[%s2820_s12 + $0x3e0] sm:$0xff] %v1253_v38  ;;  %v1190_v60 = vadd.f32 %v2264_v16, %v1062_v40  ;;  %v1254_v12 = vadd.f32 %v2265_v26, %v1126_v33 }
 0x187   : > { %1320 = vst [vmem:[%s2820_s12 + $0x1f8] sm:$0xff] %v1192_v6  ;;  %1384 = vst [vmem:[%s2820_s12 + $0x3f8] sm:$0xff] %v1256_v32 }
 0x188   : > { %1318 = vst [vmem:[%s2820_s12 + $0x1e8] sm:$0xff] %v1190_v60  ;;  %1382 = vst [vmem:[%s2820_s12 + $0x3e8] sm:$0xff] %v1254_v12 }
 0x189   : > { %s3527_s29 = smov (!%p1394_p8, %s1393_s29), 128 }
 0x18a   : > { %s1870_s5 = sshll.u32 %s3527_s29, 7 }
 0x18b   : > { %p1873_p9 = scmp.eq.s32.totalorder %s1870_s5, 0 }
 0x18c   : > { %s3212_s8 = sshrl.u32 (!%p1873_p9), %s3527_s29, 6 }
 0x18d   : > { %1402 = sbr.rel (%p1873_p9) target bundleno = 465 (0x1d1), region = 40  ;;  %p1874_p10 = scmp.le.s32.totalorder (!%p1873_p9), %s3212_s8, 0 }
 0x194   : > { %1808 = sbr.rel (%p1874_p10) target bundleno = 444 (0x1bc), region = 116  ;;  %s3518_s15 = smov (!%p1874_p10), %s3206_s7 }
 0x195   : > { %s3519_s20 = smov (!%p1874_p10), %s2820_s12  ;;  %s3221_s23 = smov (!%p1874_p10), 0  }
 0x196   : > { %s3223_s9 = smov (!%p1874_p10), 0  }
 0x19b LB: >> { %v1590_v39 = vld [vmem:[%s2328_s20] sm:$0xff]  ;;  %v1592_v41 = vld [vmem:[%s2328_s20 + $0x8] sm:$0xff]  ;;  %v1594_v28 = vld [vmem:[%s2328_s20 + $0x10] sm:$0xff]  ;;  %s1718_s10 = sadd.s32 1, %s2332_s23  ;;  %s1584_s9 = sadd.s32 1, %s2336_s9   ;;  %s2336_s9 = sphi %s3223_s9, %s1584_s9   ;;  %s2332_s23 = sphi %s3221_s23, %s3522_s23   ;;  %s2328_s20 = sphi %s3519_s20, %s3521_s20   ;;  %s2324_s15 = sphi %s3518_s15, %s3520_s15  }
 0x19c   : >> { %1591 = vst [vmem:[%s2324_s15] sm:$0xff] %v1590_v39  ;;  %1593 = vst [vmem:[%s2324_s15 + $0x8] sm:$0xff] %v1592_v41  ;;  %v1596_v62 = vld [vmem:[%s2328_s20 + $0x18] sm:$0xff]  ;;  %v1598_v0 = vld [vmem:[%s2328_s20 + $0x20] sm:$0xff]  ;;  %p1719_p11 = scmp.ge.s32.totalorder %s1718_s10, %s3212_s8  ;;  %p1583_p12 = scmp.ge.s32.totalorder %s1584_s9, %s3212_s8 }
 0x19d   : >> { %1595 = vst [vmem:[%s2324_s15 + $0x10] sm:$0xff] %v1594_v28  ;;  %v1600_v31 = vld [vmem:[%s2328_s20 + $0x28] sm:$0xff]  ;;  %1597 = vst [vmem:[%s2324_s15 + $0x18] sm:$0xff] %v1596_v62  ;;  %v1602_v11 = vld [vmem:[%s2328_s20 + $0x30] sm:$0xff] }
 0x19e   : >> { %1599 = vst [vmem:[%s2324_s15 + $0x20] sm:$0xff] %v1598_v0  ;;  %1601 = vst [vmem:[%s2324_s15 + $0x28] sm:$0xff] %v1600_v31  ;;  %v1604_v54 = vld [vmem:[%s2328_s20 + $0x38] sm:$0xff]  ;;  %v1606_v56 = vld [vmem:[%s2328_s20 + $0x40] sm:$0xff]  ;;  %s3529_s10 = smov (%p1719_p11, %s1718_s10), 0 }
 0x19f   : >> { %1603 = vst [vmem:[%s2324_s15 + $0x30] sm:$0xff] %v1602_v11  ;;  %1605 = vst [vmem:[%s2324_s15 + $0x38] sm:$0xff] %v1604_v54  ;;  %v1608_v9 = vld [vmem:[%s2328_s20 + $0x48] sm:$0xff]  ;;  %v1610_v18 = vld [vmem:[%s2328_s20 + $0x50] sm:$0xff]  ;;  %s1875_s11 = sshll.u32 %s3529_s10, 9  ;;  %s3522_s23 = smov %s3529_s10 }
 0x1a0   : >> { %1607 = vst [vmem:[%s2324_s15 + $0x40] sm:$0xff] %v1606_v56  ;;  %v1612_v63 = vld [vmem:[%s2328_s20 + $0x58] sm:$0xff]  ;;  %1609 = vst [vmem:[%s2324_s15 + $0x48] sm:$0xff] %v1608_v9  ;;  %v1614_v1 = vld [vmem:[%s2328_s20 + $0x60] sm:$0xff]  ;;  %s3279_s14 = scalar_lea.vmem %s2820_s12, %s1875_s11 [#allocation2]   ;;  %s3282_s17 = scalar_lea.vmem %s3206_s7, %s1875_s11  }
 0x1a1   : >> { %1611 = vst [vmem:[%s2324_s15 + $0x50] sm:$0xff] %v1610_v18  ;;  %1613 = vst [vmem:[%s2324_s15 + $0x58] sm:$0xff] %v1612_v63  ;;  %v1616_v20 = vld [vmem:[%s2328_s20 + $0x68] sm:$0xff]  ;;  %v1618_v55 = vld [vmem:[%s2328_s20 + $0x70] sm:$0xff] }
 0x1a2   : >> { %1615 = vst [vmem:[%s2324_s15 + $0x60] sm:$0xff] %v1614_v1  ;;  %1617 = vst [vmem:[%s2324_s15 + $0x68] sm:$0xff] %v1616_v20  ;;  %v1620_v34 = vld [vmem:[%s2328_s20 + $0x78] sm:$0xff]  ;;  %v1622_v57 = vld [vmem:[%s2328_s20 + $0x80] sm:$0xff] }
 0x1a3   : >> { %1619 = vst [vmem:[%s2324_s15 + $0x70] sm:$0xff] %v1618_v55  ;;  %v1624_v37 = vld [vmem:[%s2328_s20 + $0x88] sm:$0xff]  ;;  %1621 = vst [vmem:[%s2324_s15 + $0x78] sm:$0xff] %v1620_v34  ;;  %v1626_v58 = vld [vmem:[%s2328_s20 + $0x90] sm:$0xff] }
 0x1a4   : >> { %1623 = vst [vmem:[%s2324_s15 + $0x80] sm:$0xff] %v1622_v57  ;;  %1625 = vst [vmem:[%s2324_s15 + $0x88] sm:$0xff] %v1624_v37  ;;  %v1628_v27 = vld [vmem:[%s2328_s20 + $0x98] sm:$0xff]  ;;  %v1630_v29 = vld [vmem:[%s2328_s20 + $0xa0] sm:$0xff] }
 0x1a5   : >> { %1627 = vst [vmem:[%s2324_s15 + $0x90] sm:$0xff] %v1626_v58  ;;  %1629 = vst [vmem:[%s2324_s15 + $0x98] sm:$0xff] %v1628_v27  ;;  %v1632_v15 = vld [vmem:[%s2328_s20 + $0xa8] sm:$0xff]  ;;  %v1634_v19 = vld [vmem:[%s2328_s20 + $0xb0] sm:$0xff] }
 0x1a6   : >> { %1631 = vst [vmem:[%s2324_s15 + $0xa0] sm:$0xff] %v1630_v29  ;;  %v1636_v17 = vld [vmem:[%s2328_s20 + $0xb8] sm:$0xff]  ;;  %1633 = vst [vmem:[%s2324_s15 + $0xa8] sm:$0xff] %v1632_v15  ;;  %v1638_v21 = vld [vmem:[%s2328_s20 + $0xc0] sm:$0xff] }
 0x1a7   : >> { %1635 = vst [vmem:[%s2324_s15 + $0xb0] sm:$0xff] %v1634_v19  ;;  %1637 = vst [vmem:[%s2324_s15 + $0xb8] sm:$0xff] %v1636_v17  ;;  %v1640_v7 = vld [vmem:[%s2328_s20 + $0xc8] sm:$0xff]  ;;  %v1642_v5 = vld [vmem:[%s2328_s20 + $0xd0] sm:$0xff] }
 0x1a8   : >> { %1639 = vst [vmem:[%s2324_s15 + $0xc0] sm:$0xff] %v1638_v21  ;;  %1641 = vst [vmem:[%s2324_s15 + $0xc8] sm:$0xff] %v1640_v7  ;;  %v1644_v13 = vld [vmem:[%s2328_s20 + $0xd8] sm:$0xff]  ;;  %v1646_v8 = vld [vmem:[%s2328_s20 + $0xe0] sm:$0xff] }
 0x1a9   : >> { %1643 = vst [vmem:[%s2324_s15 + $0xd0] sm:$0xff] %v1642_v5  ;;  %v1648_v61 = vld [vmem:[%s2328_s20 + $0xe8] sm:$0xff]  ;;  %1645 = vst [vmem:[%s2324_s15 + $0xd8] sm:$0xff] %v1644_v13  ;;  %v1650_v50 = vld [vmem:[%s2328_s20 + $0xf0] sm:$0xff] }
 0x1aa   : >> { %1647 = vst [vmem:[%s2324_s15 + $0xe0] sm:$0xff] %v1646_v8  ;;  %1649 = vst [vmem:[%s2324_s15 + $0xe8] sm:$0xff] %v1648_v61  ;;  %v1652_v52 = vld [vmem:[%s2328_s20 + $0xf8] sm:$0xff]  ;;  %v1654_v36 = vld [vmem:[%s2328_s20 + $0x100] sm:$0xff] }
 0x1ab   : >> { %1651 = vst [vmem:[%s2324_s15 + $0xf0] sm:$0xff] %v1650_v50  ;;  %1653 = vst [vmem:[%s2324_s15 + $0xf8] sm:$0xff] %v1652_v52  ;;  %v1656_v47 = vld [vmem:[%s2328_s20 + $0x108] sm:$0xff]  ;;  %v1658_v42 = vld [vmem:[%s2328_s20 + $0x110] sm:$0xff] }
 0x1ac   : >> { %1655 = vst [vmem:[%s2324_s15 + $0x100] sm:$0xff] %v1654_v36  ;;  %v1660_v44 = vld [vmem:[%s2328_s20 + $0x118] sm:$0xff]  ;;  %1657 = vst [vmem:[%s2324_s15 + $0x108] sm:$0xff] %v1656_v47  ;;  %v1662_v49 = vld [vmem:[%s2328_s20 + $0x120] sm:$0xff] }
 0x1ad   : >> { %1659 = vst [vmem:[%s2324_s15 + $0x110] sm:$0xff] %v1658_v42  ;;  %1661 = vst [vmem:[%s2324_s15 + $0x118] sm:$0xff] %v1660_v44  ;;  %v1664_v22 = vld [vmem:[%s2328_s20 + $0x128] sm:$0xff]  ;;  %v1666_v24 = vld [vmem:[%s2328_s20 + $0x130] sm:$0xff] }
 0x1ae   : >> { %1663 = vst [vmem:[%s2324_s15 + $0x120] sm:$0xff] %v1662_v49  ;;  %1665 = vst [vmem:[%s2324_s15 + $0x128] sm:$0xff] %v1664_v22  ;;  %v1668_v10 = vld [vmem:[%s2328_s20 + $0x138] sm:$0xff]  ;;  %v1670_v23 = vld [vmem:[%s2328_s20 + $0x140] sm:$0xff] }
 0x1af   : >> { %1667 = vst [vmem:[%s2324_s15 + $0x130] sm:$0xff] %v1666_v24  ;;  %v1672_v51 = vld [vmem:[%s2328_s20 + $0x148] sm:$0xff]  ;;  %1669 = vst [vmem:[%s2324_s15 + $0x138] sm:$0xff] %v1668_v10  ;;  %v1674_v53 = vld [vmem:[%s2328_s20 + $0x150] sm:$0xff] }
 0x1b0   : >> { %1671 = vst [vmem:[%s2324_s15 + $0x140] sm:$0xff] %v1670_v23  ;;  %1673 = vst [vmem:[%s2324_s15 + $0x148] sm:$0xff] %v1672_v51  ;;  %v1676_v2 = vld [vmem:[%s2328_s20 + $0x158] sm:$0xff]  ;;  %v1678_v3 = vld [vmem:[%s2328_s20 + $0x160] sm:$0xff] }
 0x1b1   : >> { %1675 = vst [vmem:[%s2324_s15 + $0x150] sm:$0xff] %v1674_v53  ;;  %1677 = vst [vmem:[%s2324_s15 + $0x158] sm:$0xff] %v1676_v2  ;;  %v1680_v43 = vld [vmem:[%s2328_s20 + $0x168] sm:$0xff]  ;;  %v1682_v59 = vld [vmem:[%s2328_s20 + $0x170] sm:$0xff] }
 0x1b2   : >> { %1679 = vst [vmem:[%s2324_s15 + $0x160] sm:$0xff] %v1678_v3  ;;  %v1684_v45 = vld [vmem:[%s2328_s20 + $0x178] sm:$0xff]  ;;  %1681 = vst [vmem:[%s2324_s15 + $0x168] sm:$0xff] %v1680_v43  ;;  %v1686_v25 = vld [vmem:[%s2328_s20 + $0x180] sm:$0xff] }
 0x1b3   : >> { %1683 = vst [vmem:[%s2324_s15 + $0x170] sm:$0xff] %v1682_v59  ;;  %1685 = vst [vmem:[%s2324_s15 + $0x178] sm:$0xff] %v1684_v45  ;;  %v1688_v48 = vld [vmem:[%s2328_s20 + $0x188] sm:$0xff]  ;;  %v1690_v46 = vld [vmem:[%s2328_s20 + $0x190] sm:$0xff] }
 0x1b4   : >> { %1687 = vst [vmem:[%s2324_s15 + $0x180] sm:$0xff] %v1686_v25  ;;  %1689 = vst [vmem:[%s2324_s15 + $0x188] sm:$0xff] %v1688_v48  ;;  %v1692_v35 = vld [vmem:[%s2328_s20 + $0x198] sm:$0xff]  ;;  %v1694_v14 = vld [vmem:[%s2328_s20 + $0x1a0] sm:$0xff] }
 0x1b5   : >> { %1691 = vst [vmem:[%s2324_s15 + $0x190] sm:$0xff] %v1690_v46  ;;  %v1696_v38 = vld [vmem:[%s2328_s20 + $0x1a8] sm:$0xff]  ;;  %1693 = vst [vmem:[%s2324_s15 + $0x198] sm:$0xff] %v1692_v35  ;;  %v1698_v40 = vld [vmem:[%s2328_s20 + $0x1b0] sm:$0xff]  ;;  %1586 = sbr.rel (!%p1583_p12) target bundleno = 411 (0x19b), region = 122 }
 0x1b6   : >> { %1695 = vst [vmem:[%s2324_s15 + $0x1a0] sm:$0xff] %v1694_v14  ;;  %1697 = vst [vmem:[%s2324_s15 + $0x1a8] sm:$0xff] %v1696_v38  ;;  %v1700_v33 = vld [vmem:[%s2328_s20 + $0x1b8] sm:$0xff]  ;;  %v1702_v4 = vld [vmem:[%s2328_s20 + $0x1c0] sm:$0xff] }
 0x1b7   : >> { %1699 = vst [vmem:[%s2324_s15 + $0x1b0] sm:$0xff] %v1698_v40  ;;  %1701 = vst [vmem:[%s2324_s15 + $0x1b8] sm:$0xff] %v1700_v33  ;;  %v1704_v6 = vld [vmem:[%s2328_s20 + $0x1c8] sm:$0xff]  ;;  %v1706_v30 = vld [vmem:[%s2328_s20 + $0x1d0] sm:$0xff] }
 0x1b8   : >> { %1703 = vst [vmem:[%s2324_s15 + $0x1c0] sm:$0xff] %v1702_v4  ;;  %v1708_v32 = vld [vmem:[%s2328_s20 + $0x1d8] sm:$0xff]  ;;  %1705 = vst [vmem:[%s2324_s15 + $0x1c8] sm:$0xff] %v1704_v6  ;;  %v1710_v16 = vld [vmem:[%s2328_s20 + $0x1e0] sm:$0xff] }
 0x1b9   : >> { %1707 = vst [vmem:[%s2324_s15 + $0x1d0] sm:$0xff] %v1706_v30  ;;  %1709 = vst [vmem:[%s2324_s15 + $0x1d8] sm:$0xff] %v1708_v32  ;;  %v1712_v60 = vld [vmem:[%s2328_s20 + $0x1e8] sm:$0xff]  ;;  %v1714_v26 = vld [vmem:[%s2328_s20 + $0x1f0] sm:$0xff] }
 0x1ba   : >> { %1711 = vst [vmem:[%s2324_s15 + $0x1e0] sm:$0xff] %v1710_v16  ;;  %1713 = vst [vmem:[%s2324_s15 + $0x1e8] sm:$0xff] %v1712_v60  ;;  %v1716_v12 = vld [vmem:[%s2328_s20 + $0x1f8] sm:$0xff]  ;;  %s3521_s20 = smov %s3279_s14 }
 0x1bb   : >> { %1715 = vst [vmem:[%s2324_s15 + $0x1f0] sm:$0xff] %v1714_v26  ;;  %1717 = vst [vmem:[%s2324_s15 + $0x1f8] sm:$0xff] %v1716_v12  ;;  %s3520_s15 = smov %s3282_s17 }
 0x1bc PF: > { %s3387_s18 = sand.u32 63, %s3527_s29   ;;  %s1886_s21 = sshll.u32 %s3212_s8, 9 }
 0x1bd   : > { %s1729_s22 = scalar_lea.vmem %s2820_s12, %s1886_s21 [#allocation2]   ;;  %s1731_s24 = scalar_lea.vmem %s3206_s7, %s1886_s21  }
 0x1be   : > { %p1880_p13 = scmp.le.s32.totalorder %s3387_s18, 0 }
 0x1bf   : > { %s2338_s25 = smov (!%p1880_p13), %s1731_s24   ;;  %s2342_s26 = smov (!%p1880_p13), %s1729_s22  }
 0x1c0   : > { %1822 = sbr.rel (%p1880_p13) target bundleno = 465 (0x1d1), region = 127  ;;  %s2346_s27 = smov (!%p1880_p13), 0  }
 0x1c1   : > { %s2350_s28 = smov (!%p1880_p13), 0  }
 0x1c7 LB: >> { %v1741_v39 = vld [vmem:[%s2344_s26] sm:$0xff]  ;;  %s1743_s29 = sadd.s32 1, %s2348_s27  ;;  %s1735_s28 = sadd.s32 1, %s2352_s28   ;;  %s2352_s28 = sphi %s2350_s28, %s1735_s28   ;;  %s2348_s27 = sphi %s2346_s27, %s2347_s27   ;;  %s2344_s26 = sphi %s2342_s26, %s1748_s26   ;;  %s2340_s25 = sphi %s2338_s25, %s1749_s25  }
 0x1c8   : >> { %1742 = vst [vmem:[%s2340_s25] sm:$0xff] %v1741_v39  ;;  %p1744_p0 = scmp.ge.s32.totalorder %s1743_s29, %s3387_s18  ;;  %p1734_p1 = scmp.ge.s32.totalorder %s1735_s28, %s3387_s18 }
 0x1ca   : >> { %s3531_s29 = smov (%p1744_p0, %s1743_s29), 0  ;;  %1737 = sbr.rel (!%p1734_p1) target bundleno = 455 (0x1c7), region = 133 }
 0x1cb   : >> { %s1881_s12 = sshll.u32 %s3531_s29, 3  ;;  %s2347_s27 = smov %s3531_s29  }
 0x1cc   : >> { %s1748_s26 = scalar_lea.vmem %s1729_s22, %s1881_s12 [#allocation2]   ;;  %s1749_s25 = scalar_lea.vmem %s1731_s24, %s1881_s12  }
 0x1d1 PF: > { %p10_p2 = scmp.ge.s32.totalorder %s2389_s16, 4   ;;  %s3523_s12 = smov %s2316_s13 }
 0x1d2   : > { %s3524_s13 = smov %s2397_s19  ;;  %s3525_s14 = smov %s2389_s16 }
 0x1d3   :  { %12 = sbr.rel (!%p10_p2) target bundleno = 2 (0x2), region = 144 }

</bundles_post_ra>
